<compile_context>
chip_gen: v7x
topology: tpu7x:2x2x1
jax: 0.10.0
libtpu: 0.0.40
codegen_flags: <defaults>
</compile_context>

<pallas_src>
import jax
import jax.numpy as jnp
import numpy as np
from jax import lax
from jax.experimental import pallas as pl
from jax.experimental.pallas import tpu as pltpu

LRELU_SLOPE = 0.2
BN_EPS = 1e-5


# ----------------------------------------------------------------------------
# Pallas kernels
# ----------------------------------------------------------------------------
def _conv_lrelu_kernel(w_ref, p_ref, o_ref):
    """y^T = W @ patches^T, LeakyReLU, store bf16.  Shapes: (C,K)x(K,tm)->(C,tm)."""
    y = jnp.dot(w_ref[...], p_ref[...], preferred_element_type=jnp.float32)
    y = jnp.where(y > 0, y, LRELU_SLOPE * y)
    o_ref[...] = y.astype(o_ref.dtype)


def _conv_bn_lrelu_kernel(w_ref, p_ref, g_ref, b_ref, o_ref):
    """Fused conv-matmul + batch-norm (batch stats) + LeakyReLU, y kept in VMEM."""
    y = jnp.dot(w_ref[...], p_ref[...], preferred_element_type=jnp.float32)  # (C, M) f32
    inv_m = 1.0 / y.shape[1]
    mean = jnp.sum(y, axis=1, keepdims=True) * inv_m                         # (C, 1)
    d = y - mean
    var = jnp.sum(d * d, axis=1, keepdims=True) * inv_m                      # centered pass
    scale = g_ref[...] * lax.rsqrt(var + BN_EPS)
    z = d * scale + b_ref[...]
    z = jnp.where(z > 0, z, LRELU_SLOPE * z)
    o_ref[...] = z.astype(o_ref.dtype)


def _conv_bn_lrelu_head_kernel(w4_ref, p_ref, g_ref, b_ref, w5_ref, sel_ref, o_ref):
    """conv4 + BN + LeakyReLU, then the 4x4 valid conv5 + sigmoid, all in one kernel.

    w5_ref is the conv5 weight tiled to (C4, M4) so that conv5 becomes an
    elementwise product + per-sample reduction (via the 0/1 selector matrix).
    """
    y = jnp.dot(w4_ref[...], p_ref[...], preferred_element_type=jnp.float32)  # (C4, M4)
    inv_m = 1.0 / y.shape[1]
    mean = jnp.sum(y, axis=1, keepdims=True) * inv_m
    d = y - mean
    var = jnp.sum(d * d, axis=1, keepdims=True) * inv_m
    scale = g_ref[...] * lax.rsqrt(var + BN_EPS)
    z = d * scale + b_ref[...]
    z = jnp.where(z > 0, z, LRELU_SLOPE * z)                                  # (C4, M4)

    prod = z * w5_ref[...]                                                    # (C4, M4)
    part = jnp.dot(prod, sel_ref[...], preferred_element_type=jnp.float32)    # (C4, N)
    logits = jnp.sum(part, axis=0, keepdims=True)                             # (1, N)
    o_ref[...] = 1.0 / (1.0 + jnp.exp(-logits))


# ----------------------------------------------------------------------------
# pallas_call wrappers
# ----------------------------------------------------------------------------
def conv_lrelu(w, pT):
    """w: (Cout, K) bf16, pT: (K, M) bf16 -> LeakyReLU(w @ pT) : (Cout, M) bf16."""
    Cout, K = w.shape
    _, M = pT.shape
    nsteps = 2 if (M % 256 == 0) else 1        # let v7x megacore split the big layer
    tm = M // nsteps
    return pl.pallas_call(
        _conv_lrelu_kernel,
        out_shape=jax.ShapeDtypeStruct((Cout, M), jnp.bfloat16),
        grid_spec=pltpu.PrefetchScalarGridSpec(
            num_scalar_prefetch=0,
            grid=(nsteps,),
            in_specs=[
                pl.BlockSpec((Cout, K), lambda i: (0, 0)),
                pl.BlockSpec((K, tm), lambda i: (0, i)),
            ],
            out_specs=pl.BlockSpec((Cout, tm), lambda i: (0, i)),
        ),
        compiler_params=pltpu.CompilerParams(dimension_semantics=("parallel",)),
    )(w, pT)


def conv_bn_lrelu(w, pT, gamma, beta):
    """Fused Conv2d(bias=False) + BatchNorm2d(train stats) + LeakyReLU(0.2)."""
    Cout, K = w.shape
    _, M = pT.shape
    return pl.pallas_call(
        _conv_bn_lrelu_kernel,
        out_shape=jax.ShapeDtypeStruct((Cout, M), jnp.bfloat16),
        grid_spec=pltpu.PrefetchScalarGridSpec(
            num_scalar_prefetch=0,
            grid=(1,),
            in_specs=[
                pl.BlockSpec((Cout, K), lambda i: (0, 0)),
                pl.BlockSpec((K, M), lambda i: (0, 0)),
                pl.BlockSpec((Cout, 1), lambda i: (0, 0)),
                pl.BlockSpec((Cout, 1), lambda i: (0, 0)),
            ],
            out_specs=pl.BlockSpec((Cout, M), lambda i: (0, 0)),
        ),
        compiler_params=pltpu.CompilerParams(dimension_semantics=("arbitrary",)),
    )(w, pT, gamma, beta)


def conv_bn_lrelu_head(w4, pT, gamma, beta, w5t, sel):
    """Fused conv4+BN+LeakyReLU followed by the 1-output conv5 + sigmoid."""
    C4, K = w4.shape
    _, M = pT.shape
    Nb = sel.shape[1]
    return pl.pallas_call(
        _conv_bn_lrelu_head_kernel,
        out_shape=jax.ShapeDtypeStruct((1, Nb), jnp.float32),
        grid_spec=pltpu.PrefetchScalarGridSpec(
            num_scalar_prefetch=0,
            grid=(1,),
            in_specs=[
                pl.BlockSpec((C4, K), lambda i: (0, 0)),
                pl.BlockSpec((K, M), lambda i: (0, 0)),
                pl.BlockSpec((C4, 1), lambda i: (0, 0)),
                pl.BlockSpec((C4, 1), lambda i: (0, 0)),
                pl.BlockSpec((C4, M), lambda i: (0, 0)),
                pl.BlockSpec((M, Nb), lambda i: (0, 0)),
            ],
            out_specs=pl.BlockSpec((1, Nb), lambda i: (0, 0)),
        ),
        compiler_params=pltpu.CompilerParams(dimension_semantics=("arbitrary",)),
    )(w4, pT, gamma, beta, w5t, sel)


# ----------------------------------------------------------------------------
# Layout plumbing (pure data movement on tiny tensors, channel-major layout)
# ----------------------------------------------------------------------------
def im2col_T(xc, k, stride, pad):
    """xc: (C, N, H, W) channel-major -> patches^T (C*k*k, N*Ho*Wo).

    Row order is (Cin, kh, kw), matching weight.reshape(Cout, Cin*k*k); column
    order is (n, ho, wo), so the kernel output (Cout, N*Ho*Wo) is already the
    channel-major layout of the next layer's input.
    """
    # TODO(synk): move the patch extraction inside the matmul kernel (16-tap
    # K-loop over a VMEM-resident input) to avoid the 16x HBM expansion.
    C, N, H, W = xc.shape
    Ho = (H + 2 * pad - k) // stride + 1
    Wo = (W + 2 * pad - k) // stride + 1
    xp = jnp.pad(xc, ((0, 0), (0, 0), (pad, pad), (pad, pad)))
    taps = []
    for i in range(k):
        for j in range(k):
            taps.append(xp[:, :, i:i + (Ho - 1) * stride + 1:stride,
                               j:j + (Wo - 1) * stride + 1:stride])
    pT = jnp.stack(taps, axis=1).reshape(C * k * k, N * Ho * Wo)
    return pT, Ho, Wo


def discriminator_forward(x, params):
    p = params
    N = x.shape[0]
    bf = jnp.bfloat16

    h = jnp.transpose(x, (1, 0, 2, 3)).astype(bf)          # (3, N, H, W) channel-major

    # conv1 + LeakyReLU
    pT, Ho, Wo = im2col_T(h, 4, 2, 1)
    w1 = p["w1"].reshape(p["w1"].shape[0], -1).astype(bf)
    y = conv_lrelu(w1, pT)                                  # (NDF, N*32*32) bf16
    h = y.reshape(-1, N, Ho, Wo)

    # conv2 / conv3: fused conv + BN(train stats) + LeakyReLU
    for wk, gk, bk in (("w2", "g2", "b2"), ("w3", "g3", "b3")):
        pT, Ho, Wo = im2col_T(h, 4, 2, 1)
        w = p[wk].reshape(p[wk].shape[0], -1).astype(bf)
        y = conv_bn_lrelu(w, pT, p[gk].reshape(-1, 1), p[bk].reshape(-1, 1))
        h = y.reshape(-1, N, Ho, Wo)

    # conv4 + BN + LeakyReLU fused with conv5 (4x4 valid) + sigmoid
    pT, Ho, Wo = im2col_T(h, 4, 2, 1)
    assert (Ho, Wo) == (4, 4), "DCGAN head expects a 4x4 pre-final feature map"
    C4 = p["w4"].shape[0]
    w4 = p["w4"].reshape(C4, -1).astype(bf)
    hw = Ho * Wo
    M4 = N * hw
    w5t = jnp.tile(p["w5"].reshape(C4, hw), (1, N)).astype(jnp.float32)   # (C4, M4)
    sel = (jnp.arange(M4)[:, None] // hw
           == jnp.arange(N)[None, :]).astype(jnp.float32)                # (M4, N)
    probs = conv_bn_lrelu_head(w4, pT, p["g4"].reshape(-1, 1),
                               p["b4"].reshape(-1, 1), w5t, sel)          # (1, N)
    return probs[0].reshape(N, 1, 1, 1)


discriminator_forward = jax.jit(discriminator_forward)


# ----------------------------------------------------------------------------
# Pure-JAX reference (f32) for correctness check
# ----------------------------------------------------------------------------
def reference_forward(x, params):
    def conv(x, w, stride, pad):
        return lax.conv_general_dilated(
            x, w, (stride, stride), [(pad, pad), (pad, pad)],
            dimension_numbers=("NCHW", "OIHW", "NCHW"))

    def bn(x, g, b):
        mean = x.mean(axis=(0, 2, 3), keepdims=True)
        var = x.var(axis=(0, 2, 3), keepdims=True)
        return (x - mean) / jnp.sqrt(var + BN_EPS) * g[None, :, None, None] \
               + b[None, :, None, None]

    lrelu = lambda v: jnp.where(v > 0, v, LRELU_SLOPE * v)
    p = params
    h = lrelu(conv(x, p["w1"], 2, 1))
    h = lrelu(bn(conv(h, p["w2"], 2, 1), p["g2"], p["b2"]))
    h = lrelu(bn(conv(h, p["w3"], 2, 1), p["g3"], p["b3"]))
    h = lrelu(bn(conv(h, p["w4"], 2, 1), p["g4"], p["b4"]))
    h = jax.nn.sigmoid(conv(h, p["w5"], 1, 0))
    return h


# ----------------------------------------------------------------------------
# Parameter init + driver
# ----------------------------------------------------------------------------
def init_params(key, ndf):
    ks = jax.random.split(key, 12)
    n = lambda k, shape, std=0.02: (std * jax.random.normal(k, shape)).astype(jnp.float32)
    return {
        "w1": n(ks[0], (ndf, 3, 4, 4)),
        "w2": n(ks[1], (ndf * 2, ndf, 4, 4)),
        "w3": n(ks[2], (ndf * 4, ndf * 2, 4, 4)),
        "w4": n(ks[3], (ndf * 8, ndf * 4, 4, 4)),
        "w5": n(ks[4], (1, ndf * 8, 4, 4)),
        "g2": 1.0 + n(ks[5], (ndf * 2,)), "b2": n(ks[6], (ndf * 2,)),
        "g3": 1.0 + n(ks[7], (ndf * 4,)), "b3": n(ks[8], (ndf * 4,)),
        "g4": 1.0 + n(ks[9], (ndf * 8,)), "b4": n(ks[10], (ndf * 8,)),
    }


if __name__ == "__main__":
    NDF = 8
    key = jax.random.PRNGKey(0)
    k_in, k_par = jax.random.split(key)
    # DCGAN discriminator geometry requires 64x64 inputs to reach the 4x4 valid conv.
    x = jax.random.normal(k_in, (2, 3, 64, 64), dtype=jnp.float32)
    params = init_params(k_par, NDF)

    out = discriminator_forward(x, params)
    out = jax.block_until_ready(out)

    ref = jax.block_until_ready(reference_forward(x, params))
    assert out.shape == (2, 1, 1, 1), out.shape
    np.testing.assert_allclose(np.asarray(out), np.asarray(ref), rtol=2e-2, atol=2e-2)

    print("KERNEL_OK")
</pallas_src>

<mosaic_0001>
module attributes {stable_mosaic.version = 11 : i64} {
  func.func @_conv_lrelu_kernel(%arg0: i32, %arg1: memref<8x48xbf16, #tpu.memory_space<vmem>>, %arg2: memref<48x1024xbf16, #tpu.memory_space<vmem>>, %arg3: memref<8x1024xbf16, #tpu.memory_space<vmem>>) attributes {dimension_semantics = [#tpu.dimension_semantics<parallel>], iteration_bounds = array<i64: 2>, scalar_prefetch = 0 : i64, scratch_operands = 0 : i64, tpu.core_type = #tpu.core_type<tc>, window_params = [{pipeline_mode = #tpu.pipeline_mode<synchronous>, transform_indices = @transform_0, window_bounds = array<i64: 8, 48>}, {transform_indices = @transform_1, window_bounds = array<i64: 48, 1024>}, {transform_indices = @transform_2, window_bounds = array<i64: 8, 1024>}]} {
    %c0 = arith.constant 0 : index
    %c0_0 = arith.constant 0 : index
    %0 = vector.load %arg1[%c0, %c0_0] : memref<8x48xbf16, #tpu.memory_space<vmem>>, vector<8x48xbf16>
    %c0_1 = arith.constant 0 : index
    %c0_2 = arith.constant 0 : index
    %1 = vector.load %arg2[%c0_1, %c0_2] : memref<48x1024xbf16, #tpu.memory_space<vmem>>, vector<48x1024xbf16>
    %cst = arith.constant dense<0.000000e+00> : vector<8x1024xf32>
    %2 = tpu.matmul %0, %1, %cst {dimension_numbers = #tpu.dot_dimension_numbers<[1], [0], [0], [1], [0, 0, 1, 1], [], []>} : vector<8x48xbf16>, vector<48x1024xbf16>, vector<8x1024xf32> -> vector<8x1024xf32>
    %cst_3 = arith.constant 0.000000e+00 : f32
    %3 = vector.broadcast %cst_3 : f32 to vector<8x1024xf32>
    %4 = arith.cmpf ogt, %2, %3 : vector<8x1024xf32>
    %cst_4 = arith.constant 2.000000e-01 : f32
    %5 = vector.broadcast %cst_4 : f32 to vector<8x1024xf32>
    %6 = arith.mulf %5, %2 : vector<8x1024xf32>
    %7 = arith.select %4, %2, %6 : vector<8x1024xi1>, vector<8x1024xf32>
    %8 = arith.truncf %7 : vector<8x1024xf32> to vector<8x1024xbf16>
    %c0_5 = arith.constant 0 : index
    %c0_6 = arith.constant 0 : index
    %9 = vector.load %arg3[%c0_5, %c0_6] : memref<8x1024xbf16, #tpu.memory_space<vmem>>, vector<8x1024xbf16>
    tpu.vector_store %arg3[%c0_5, %c0_6], %8 {strides = array<i32>} : memref<8x1024xbf16, #tpu.memory_space<vmem>>, vector<8x1024xbf16>,
    return
  }
  func.func @transform_0(%arg0: i32) -> (i32, i32) {
    %c0_i32 = arith.constant 0 : i32
    %c0_i32_0 = arith.constant 0 : i32
    %c0_i32_1 = arith.constant 0 : i32
    return %c0_i32, %c0_i32_0 : i32, i32
  }
  func.func @transform_1(%arg0: i32) -> (i32, i32) {
    %c0_i32 = arith.constant 0 : i32
    %c0_i32_0 = arith.constant 0 : i32
    return %c0_i32, %arg0 : i32, i32
  }
  func.func @transform_2(%arg0: i32) -> (i32, i32) {
    %c0_i32 = arith.constant 0 : i32
    %c0_i32_0 = arith.constant 0 : i32
    return %c0_i32, %arg0 : i32, i32
  }
}

module attributes {stable_mosaic.version = 11 : i64} {
  func.func @_conv_bn_lrelu_kernel(%arg0: i32, %arg1: memref<16x128xbf16, #tpu.memory_space<vmem>>, %arg2: memref<128x512xbf16, #tpu.memory_space<vmem>>, %arg3: memref<16x1xf32, #tpu.memory_space<vmem>>, %arg4: memref<16x1xf32, #tpu.memory_space<vmem>>, %arg5: memref<16x512xbf16, #tpu.memory_space<vmem>>) attributes {dimension_semantics = [#tpu.dimension_semantics<arbitrary>], iteration_bounds = array<i64: 1>, scalar_prefetch = 0 : i64, scratch_operands = 0 : i64, tpu.core_type = #tpu.core_type<tc>, window_params = [{pipeline_mode = #tpu.pipeline_mode<synchronous>, transform_indices = @transform_0, window_bounds = array<i64: 16, 128>}, {pipeline_mode = #tpu.pipeline_mode<synchronous>, transform_indices = @transform_1, window_bounds = array<i64: 128, 512>}, {pipeline_mode = #tpu.pipeline_mode<synchronous>, transform_indices = @transform_2, window_bounds = array<i64: 16, 1>}, {pipeline_mode = #tpu.pipeline_mode<synchronous>, transform_indices = @transform_3, window_bounds = array<i64: 16, 1>}, {pipeline_mode = #tpu.pipeline_mode<synchronous>, transform_indices = @transform_4, window_bounds = array<i64: 16, 512>}]} {
    %c0 = arith.constant 0 : index
    %c0_0 = arith.constant 0 : index
    %0 = vector.load %arg1[%c0, %c0_0] : memref<16x128xbf16, #tpu.memory_space<vmem>>, vector<16x128xbf16>
    %c0_1 = arith.constant 0 : index
    %c0_2 = arith.constant 0 : index
    %1 = vector.load %arg2[%c0_1, %c0_2] : memref<128x512xbf16, #tpu.memory_space<vmem>>, vector<128x512xbf16>
    %cst = arith.constant dense<0.000000e+00> : vector<16x512xf32>
    %2 = tpu.matmul %0, %1, %cst {dimension_numbers = #tpu.dot_dimension_numbers<[1], [0], [0], [1], [0, 0, 1, 1], [], []>} : vector<16x128xbf16>, vector<128x512xbf16>, vector<16x512xf32> -> vector<16x512xf32>
    %cst_3 = arith.constant dense<0.000000e+00> : vector<16xf32>
    %3 = vector.multi_reduction <add>, %2, %cst_3 [1] : vector<16x512xf32> to vector<16xf32>
    %4 = vector.shape_cast %3 : vector<16xf32> to vector<16x1xf32>
    %cst_4 = arith.constant 0.001953125 : f32
    %5 = vector.broadcast %cst_4 : f32 to vector<16x1xf32>
    %6 = arith.mulf %4, %5 : vector<16x1xf32>
    %7 = vector.broadcast %6 : vector<16x1xf32> to vector<16x512xf32>
    %8 = arith.subf %2, %7 : vector<16x512xf32>
    %9 = arith.mulf %8, %8 : vector<16x512xf32>
    %cst_5 = arith.constant dense<0.000000e+00> : vector<16xf32>
    %10 = vector.multi_reduction <add>, %9, %cst_5 [1] : vector<16x512xf32> to vector<16xf32>
    %11 = vector.shape_cast %10 : vector<16xf32> to vector<16x1xf32>
    %cst_6 = arith.constant 0.001953125 : f32
    %12 = vector.broadcast %cst_6 : f32 to vector<16x1xf32>
    %13 = arith.mulf %11, %12 : vector<16x1xf32>
    %c0_7 = arith.constant 0 : index
    %c0_8 = arith.constant 0 : index
    %14 = vector.load %arg3[%c0_7, %c0_8] : memref<16x1xf32, #tpu.memory_space<vmem>>, vector<16x1xf32>
    %cst_9 = arith.constant 9.99999974E-6 : f32
    %15 = vector.broadcast %cst_9 : f32 to vector<16x1xf32>
    %16 = arith.addf %13, %15 : vector<16x1xf32>
    %17 = math.rsqrt %16 : vector<16x1xf32>
    %18 = arith.mulf %14, %17 : vector<16x1xf32>
    %19 = vector.broadcast %18 : vector<16x1xf32> to vector<16x512xf32>
    %20 = arith.mulf %8, %19 : vector<16x512xf32>
    %c0_10 = arith.constant 0 : index
    %c0_11 = arith.constant 0 : index
    %21 = vector.load %arg4[%c0_10, %c0_11] : memref<16x1xf32, #tpu.memory_space<vmem>>, vector<16x1xf32>
    %22 = vector.broadcast %21 : vector<16x1xf32> to vector<16x512xf32>
    %23 = arith.addf %20, %22 : vector<16x512xf32>
    %cst_12 = arith.constant 0.000000e+00 : f32
    %24 = vector.broadcast %cst_12 : f32 to vector<16x512xf32>
    %25 = arith.cmpf ogt, %23, %24 : vector<16x512xf32>
    %cst_13 = arith.constant 2.000000e-01 : f32
    %26 = vector.broadcast %cst_13 : f32 to vector<16x512xf32>
    %27 = arith.mulf %26, %23 : vector<16x512xf32>
    %28 = arith.select %25, %23, %27 : vector<16x512xi1>, vector<16x512xf32>
    %29 = arith.truncf %28 : vector<16x512xf32> to vector<16x512xbf16>
    %c0_14 = arith.constant 0 : index
    %c0_15 = arith.constant 0 : index
    %30 = vector.load %arg5[%c0_14, %c0_15] : memref<16x512xbf16, #tpu.memory_space<vmem>>, vector<16x512xbf16>
    tpu.vector_store %arg5[%c0_14, %c0_15], %29 {strides = array<i32>} : memref<16x512xbf16, #tpu.memory_space<vmem>>, vector<16x512xbf16>,
    return
  }
  func.func @transform_0(%arg0: i32) -> (i32, i32) {
    %c0_i32 = arith.constant 0 : i32
    %c0_i32_0 = arith.constant 0 : i32
    %c0_i32_1 = arith.constant 0 : i32
    return %c0_i32, %c0_i32_0 : i32, i32
  }
  func.func @transform_1(%arg0: i32) -> (i32, i32) {
    %c0_i32 = arith.constant 0 : i32
    %c0_i32_0 = arith.constant 0 : i32
    %c0_i32_1 = arith.constant 0 : i32
    return %c0_i32, %c0_i32_0 : i32, i32
  }
  func.func @transform_2(%arg0: i32) -> (i32, i32) {
    %c0_i32 = arith.constant 0 : i32
    %c0_i32_0 = arith.constant 0 : i32
    %c0_i32_1 = arith.constant 0 : i32
    return %c0_i32, %c0_i32_0 : i32, i32
  }
  func.func @transform_3(%arg0: i32) -> (i32, i32) {
    %c0_i32 = arith.constant 0 : i32
    %c0_i32_0 = arith.constant 0 : i32
    %c0_i32_1 = arith.constant 0 : i32
    return %c0_i32, %c0_i32_0 : i32, i32
  }
  func.func @transform_4(%arg0: i32) -> (i32, i32) {
    %c0_i32 = arith.constant 0 : i32
    %c0_i32_0 = arith.constant 0 : i32
    %c0_i32_1 = arith.constant 0 : i32
    return %c0_i32, %c0_i32_0 : i32, i32
  }
}

module attributes {stable_mosaic.version = 11 : i64} {
  func.func @_conv_bn_lrelu_kernel(%arg0: i32, %arg1: memref<32x256xbf16, #tpu.memory_space<vmem>>, %arg2: memref<256x128xbf16, #tpu.memory_space<vmem>>, %arg3: memref<32x1xf32, #tpu.memory_space<vmem>>, %arg4: memref<32x1xf32, #tpu.memory_space<vmem>>, %arg5: memref<32x128xbf16, #tpu.memory_space<vmem>>) attributes {dimension_semantics = [#tpu.dimension_semantics<arbitrary>], iteration_bounds = array<i64: 1>, scalar_prefetch = 0 : i64, scratch_operands = 0 : i64, tpu.core_type = #tpu.core_type<tc>, window_params = [{pipeline_mode = #tpu.pipeline_mode<synchronous>, transform_indices = @transform_0, window_bounds = array<i64: 32, 256>}, {pipeline_mode = #tpu.pipeline_mode<synchronous>, transform_indices = @transform_1, window_bounds = array<i64: 256, 128>}, {pipeline_mode = #tpu.pipeline_mode<synchronous>, transform_indices = @transform_2, window_bounds = array<i64: 32, 1>}, {pipeline_mode = #tpu.pipeline_mode<synchronous>, transform_indices = @transform_3, window_bounds = array<i64: 32, 1>}, {pipeline_mode = #tpu.pipeline_mode<synchronous>, transform_indices = @transform_4, window_bounds = array<i64: 32, 128>}]} {
    %c0 = arith.constant 0 : index
    %c0_0 = arith.constant 0 : index
    %0 = vector.load %arg1[%c0, %c0_0] : memref<32x256xbf16, #tpu.memory_space<vmem>>, vector<32x256xbf16>
    %c0_1 = arith.constant 0 : index
    %c0_2 = arith.constant 0 : index
    %1 = vector.load %arg2[%c0_1, %c0_2] : memref<256x128xbf16, #tpu.memory_space<vmem>>, vector<256x128xbf16>
    %cst = arith.constant dense<0.000000e+00> : vector<32x128xf32>
    %2 = tpu.matmul %0, %1, %cst {dimension_numbers = #tpu.dot_dimension_numbers<[1], [0], [0], [1], [0, 0, 1, 1], [], []>} : vector<32x256xbf16>, vector<256x128xbf16>, vector<32x128xf32> -> vector<32x128xf32>
    %cst_3 = arith.constant dense<0.000000e+00> : vector<32xf32>
    %3 = vector.multi_reduction <add>, %2, %cst_3 [1] : vector<32x128xf32> to vector<32xf32>
    %4 = vector.shape_cast %3 : vector<32xf32> to vector<32x1xf32>
    %cst_4 = arith.constant 7.812500e-03 : f32
    %5 = vector.broadcast %cst_4 : f32 to vector<32x1xf32>
    %6 = arith.mulf %4, %5 : vector<32x1xf32>
    %7 = vector.broadcast %6 : vector<32x1xf32> to vector<32x128xf32>
    %8 = arith.subf %2, %7 : vector<32x128xf32>
    %9 = arith.mulf %8, %8 : vector<32x128xf32>
    %cst_5 = arith.constant dense<0.000000e+00> : vector<32xf32>
    %10 = vector.multi_reduction <add>, %9, %cst_5 [1] : vector<32x128xf32> to vector<32xf32>
    %11 = vector.shape_cast %10 : vector<32xf32> to vector<32x1xf32>
    %cst_6 = arith.constant 7.812500e-03 : f32
    %12 = vector.broadcast %cst_6 : f32 to vector<32x1xf32>
    %13 = arith.mulf %11, %12 : vector<32x1xf32>
    %c0_7 = arith.constant 0 : index
    %c0_8 = arith.constant 0 : index
    %14 = vector.load %arg3[%c0_7, %c0_8] : memref<32x1xf32, #tpu.memory_space<vmem>>, vector<32x1xf32>
    %cst_9 = arith.constant 9.99999974E-6 : f32
    %15 = vector.broadcast %cst_9 : f32 to vector<32x1xf32>
    %16 = arith.addf %13, %15 : vector<32x1xf32>
    %17 = math.rsqrt %16 : vector<32x1xf32>
    %18 = arith.mulf %14, %17 : vector<32x1xf32>
    %19 = vector.broadcast %18 : vector<32x1xf32> to vector<32x128xf32>
    %20 = arith.mulf %8, %19 : vector<32x128xf32>
    %c0_10 = arith.constant 0 : index
    %c0_11 = arith.constant 0 : index
    %21 = vector.load %arg4[%c0_10, %c0_11] : memref<32x1xf32, #tpu.memory_space<vmem>>, vector<32x1xf32>
    %22 = vector.broadcast %21 : vector<32x1xf32> to vector<32x128xf32>
    %23 = arith.addf %20, %22 : vector<32x128xf32>
    %cst_12 = arith.constant 0.000000e+00 : f32
    %24 = vector.broadcast %cst_12 : f32 to vector<32x128xf32>
    %25 = arith.cmpf ogt, %23, %24 : vector<32x128xf32>
    %cst_13 = arith.constant 2.000000e-01 : f32
    %26 = vector.broadcast %cst_13 : f32 to vector<32x128xf32>
    %27 = arith.mulf %26, %23 : vector<32x128xf32>
    %28 = arith.select %25, %23, %27 : vector<32x128xi1>, vector<32x128xf32>
    %29 = arith.truncf %28 : vector<32x128xf32> to vector<32x128xbf16>
    %c0_14 = arith.constant 0 : index
    %c0_15 = arith.constant 0 : index
    %30 = vector.load %arg5[%c0_14, %c0_15] : memref<32x128xbf16, #tpu.memory_space<vmem>>, vector<32x128xbf16>
    tpu.vector_store %arg5[%c0_14, %c0_15], %29 {strides = array<i32>} : memref<32x128xbf16, #tpu.memory_space<vmem>>, vector<32x128xbf16>,
    return
  }
  func.func @transform_0(%arg0: i32) -> (i32, i32) {
    %c0_i32 = arith.constant 0 : i32
    %c0_i32_0 = arith.constant 0 : i32
    %c0_i32_1 = arith.constant 0 : i32
    return %c0_i32, %c0_i32_0 : i32, i32
  }
  func.func @transform_1(%arg0: i32) -> (i32, i32) {
    %c0_i32 = arith.constant 0 : i32
    %c0_i32_0 = arith.constant 0 : i32
    %c0_i32_1 = arith.constant 0 : i32
    return %c0_i32, %c0_i32_0 : i32, i32
  }
  func.func @transform_2(%arg0: i32) -> (i32, i32) {
    %c0_i32 = arith.constant 0 : i32
    %c0_i32_0 = arith.constant 0 : i32
    %c0_i32_1 = arith.constant 0 : i32
    return %c0_i32, %c0_i32_0 : i32, i32
  }
  func.func @transform_3(%arg0: i32) -> (i32, i32) {
    %c0_i32 = arith.constant 0 : i32
    %c0_i32_0 = arith.constant 0 : i32
    %c0_i32_1 = arith.constant 0 : i32
    return %c0_i32, %c0_i32_0 : i32, i32
  }
  func.func @transform_4(%arg0: i32) -> (i32, i32) {
    %c0_i32 = arith.constant 0 : i32
    %c0_i32_0 = arith.constant 0 : i32
    %c0_i32_1 = arith.constant 0 : i32
    return %c0_i32, %c0_i32_0 : i32, i32
  }
}

module attributes {stable_mosaic.version = 11 : i64} {
  func.func @_conv_bn_lrelu_head_kernel(%arg0: i32, %arg1: memref<64x512xbf16, #tpu.memory_space<vmem>>, %arg2: memref<512x32xbf16, #tpu.memory_space<vmem>>, %arg3: memref<64x1xf32, #tpu.memory_space<vmem>>, %arg4: memref<64x1xf32, #tpu.memory_space<vmem>>, %arg5: memref<64x32xf32, #tpu.memory_space<vmem>>, %arg6: memref<32x2xf32, #tpu.memory_space<vmem>>, %arg7: memref<1x2xf32, #tpu.memory_space<vmem>>) attributes {dimension_semantics = [#tpu.dimension_semantics<arbitrary>], iteration_bounds = array<i64: 1>, scalar_prefetch = 0 : i64, scratch_operands = 0 : i64, tpu.core_type = #tpu.core_type<tc>, window_params = [{pipeline_mode = #tpu.pipeline_mode<synchronous>, transform_indices = @transform_0, window_bounds = array<i64: 64, 512>}, {pipeline_mode = #tpu.pipeline_mode<synchronous>, transform_indices = @transform_1, window_bounds = array<i64: 512, 32>}, {pipeline_mode = #tpu.pipeline_mode<synchronous>, transform_indices = @transform_2, window_bounds = array<i64: 64, 1>}, {pipeline_mode = #tpu.pipeline_mode<synchronous>, transform_indices = @transform_3, window_bounds = array<i64: 64, 1>}, {pipeline_mode = #tpu.pipeline_mode<synchronous>, transform_indices = @transform_4, window_bounds = array<i64: 64, 32>}, {pipeline_mode = #tpu.pipeline_mode<synchronous>, transform_indices = @transform_5, window_bounds = array<i64: 32, 2>}, {pipeline_mode = #tpu.pipeline_mode<synchronous>, transform_indices = @transform_6, window_bounds = array<i64: 1, 2>}]} {
    %c0 = arith.constant 0 : index
    %c0_0 = arith.constant 0 : index
    %0 = vector.load %arg1[%c0, %c0_0] : memref<64x512xbf16, #tpu.memory_space<vmem>>, vector<64x512xbf16>
    %c0_1 = arith.constant 0 : index
    %c0_2 = arith.constant 0 : index
    %1 = vector.load %arg2[%c0_1, %c0_2] : memref<512x32xbf16, #tpu.memory_space<vmem>>, vector<512x32xbf16>
    %cst = arith.constant dense<0.000000e+00> : vector<64x32xf32>
    %2 = tpu.matmul %0, %1, %cst {dimension_numbers = #tpu.dot_dimension_numbers<[1], [0], [0], [1], [0, 0, 1, 1], [], []>} : vector<64x512xbf16>, vector<512x32xbf16>, vector<64x32xf32> -> vector<64x32xf32>
    %cst_3 = arith.constant dense<0.000000e+00> : vector<64xf32>
    %3 = vector.multi_reduction <add>, %2, %cst_3 [1] : vector<64x32xf32> to vector<64xf32>
    %4 = vector.shape_cast %3 : vector<64xf32> to vector<64x1xf32>
    %cst_4 = arith.constant 3.125000e-02 : f32
    %5 = vector.broadcast %cst_4 : f32 to vector<64x1xf32>
    %6 = arith.mulf %4, %5 : vector<64x1xf32>
    %7 = vector.broadcast %6 : vector<64x1xf32> to vector<64x32xf32>
    %8 = arith.subf %2, %7 : vector<64x32xf32>
    %9 = arith.mulf %8, %8 : vector<64x32xf32>
    %cst_5 = arith.constant dense<0.000000e+00> : vector<64xf32>
    %10 = vector.multi_reduction <add>, %9, %cst_5 [1] : vector<64x32xf32> to vector<64xf32>
    %11 = vector.shape_cast %10 : vector<64xf32> to vector<64x1xf32>
    %cst_6 = arith.constant 3.125000e-02 : f32
    %12 = vector.broadcast %cst_6 : f32 to vector<64x1xf32>
    %13 = arith.mulf %11, %12 : vector<64x1xf32>
    %c0_7 = arith.constant 0 : index
    %c0_8 = arith.constant 0 : index
    %14 = vector.load %arg3[%c0_7, %c0_8] : memref<64x1xf32, #tpu.memory_space<vmem>>, vector<64x1xf32>
    %cst_9 = arith.constant 9.99999974E-6 : f32
    %15 = vector.broadcast %cst_9 : f32 to vector<64x1xf32>
    %16 = arith.addf %13, %15 : vector<64x1xf32>
    %17 = math.rsqrt %16 : vector<64x1xf32>
    %18 = arith.mulf %14, %17 : vector<64x1xf32>
    %19 = vector.broadcast %18 : vector<64x1xf32> to vector<64x32xf32>
    %20 = arith.mulf %8, %19 : vector<64x32xf32>
    %c0_10 = arith.constant 0 : index
    %c0_11 = arith.constant 0 : index
    %21 = vector.load %arg4[%c0_10, %c0_11] : memref<64x1xf32, #tpu.memory_space<vmem>>, vector<64x1xf32>
    %22 = vector.broadcast %21 : vector<64x1xf32> to vector<64x32xf32>
    %23 = arith.addf %20, %22 : vector<64x32xf32>
    %cst_12 = arith.constant 0.000000e+00 : f32
    %24 = vector.broadcast %cst_12 : f32 to vector<64x32xf32>
    %25 = arith.cmpf ogt, %23, %24 : vector<64x32xf32>
    %cst_13 = arith.constant 2.000000e-01 : f32
    %26 = vector.broadcast %cst_13 : f32 to vector<64x32xf32>
    %27 = arith.mulf %26, %23 : vector<64x32xf32>
    %28 = arith.select %25, %23, %27 : vector<64x32xi1>, vector<64x32xf32>
    %c0_14 = arith.constant 0 : index
    %c0_15 = arith.constant 0 : index
    %29 = vector.load %arg5[%c0_14, %c0_15] : memref<64x32xf32, #tpu.memory_space<vmem>>, vector<64x32xf32>
    %30 = arith.mulf %28, %29 : vector<64x32xf32>
    %c0_16 = arith.constant 0 : index
    %c0_17 = arith.constant 0 : index
    %31 = vector.load %arg6[%c0_16, %c0_17] : memref<32x2xf32, #tpu.memory_space<vmem>>, vector<32x2xf32>
    %cst_18 = arith.constant dense<0.000000e+00> : vector<64x2xf32>
    %32 = tpu.matmul %30, %31, %cst_18 {dimension_numbers = #tpu.dot_dimension_numbers<[1], [0], [0], [1], [0, 0, 1, 1], [], []>} : vector<64x32xf32>, vector<32x2xf32>, vector<64x2xf32> -> vector<64x2xf32>
    %cst_19 = arith.constant dense<0.000000e+00> : vector<2xf32>
    %33 = vector.multi_reduction <add>, %32, %cst_19 [0] : vector<64x2xf32> to vector<2xf32>
    %34 = vector.shape_cast %33 : vector<2xf32> to vector<1x2xf32>
    %cst_20 = arith.constant 0.000000e+00 : f32
    %35 = vector.broadcast %cst_20 : f32 to vector<1x2xf32>
    %36 = arith.subf %35, %34 : vector<1x2xf32>
    %37 = math.exp %36 : vector<1x2xf32>
    %cst_21 = arith.constant 1.000000e+00 : f32
    %38 = vector.broadcast %cst_21 : f32 to vector<1x2xf32>
    %39 = arith.addf %38, %37 : vector<1x2xf32>
    %cst_22 = arith.constant 1.000000e+00 : f32
    %40 = vector.broadcast %cst_22 : f32 to vector<1x2xf32>
    %41 = arith.divf %40, %39 : vector<1x2xf32>
    %c0_23 = arith.constant 0 : index
    %c0_24 = arith.constant 0 : index
    %42 = vector.load %arg7[%c0_23, %c0_24] : memref<1x2xf32, #tpu.memory_space<vmem>>, vector<1x2xf32>
    tpu.vector_store %arg7[%c0_23, %c0_24], %41 {strides = array<i32>} : memref<1x2xf32, #tpu.memory_space<vmem>>, vector<1x2xf32>,
    return
  }
  func.func @transform_0(%arg0: i32) -> (i32, i32) {
    %c0_i32 = arith.constant 0 : i32
    %c0_i32_0 = arith.constant 0 : i32
    %c0_i32_1 = arith.constant 0 : i32
    return %c0_i32, %c0_i32_0 : i32, i32
  }
  func.func @transform_1(%arg0: i32) -> (i32, i32) {
    %c0_i32 = arith.constant 0 : i32
    %c0_i32_0 = arith.constant 0 : i32
    %c0_i32_1 = arith.constant 0 : i32
    return %c0_i32, %c0_i32_0 : i32, i32
  }
  func.func @transform_2(%arg0: i32) -> (i32, i32) {
    %c0_i32 = arith.constant 0 : i32
    %c0_i32_0 = arith.constant 0 : i32
    %c0_i32_1 = arith.constant 0 : i32
    return %c0_i32, %c0_i32_0 : i32, i32
  }
  func.func @transform_3(%arg0: i32) -> (i32, i32) {
    %c0_i32 = arith.constant 0 : i32
    %c0_i32_0 = arith.constant 0 : i32
    %c0_i32_1 = arith.constant 0 : i32
    return %c0_i32, %c0_i32_0 : i32, i32
  }
  func.func @transform_4(%arg0: i32) -> (i32, i32) {
    %c0_i32 = arith.constant 0 : i32
    %c0_i32_0 = arith.constant 0 : i32
    %c0_i32_1 = arith.constant 0 : i32
    return %c0_i32, %c0_i32_0 : i32, i32
  }
  func.func @transform_5(%arg0: i32) -> (i32, i32) {
    %c0_i32 = arith.constant 0 : i32
    %c0_i32_0 = arith.constant 0 : i32
    %c0_i32_1 = arith.constant 0 : i32
    return %c0_i32, %c0_i32_0 : i32, i32
  }
  func.func @transform_6(%arg0: i32) -> (i32, i32) {
    %c0_i32 = arith.constant 0 : i32
    %c0_i32_0 = arith.constant 0 : i32
    %c0_i32_1 = arith.constant 0 : i32
    return %c0_i32, %c0_i32_0 : i32, i32
  }
}

</mosaic_0001>

<bundles_post_ra>
// kernel: discriminator_forward.4
= control target key start
LH: loop header
LB: loop body
LE: loop exit
PB: predicated region body
PF: predicated region fallthrough
CT: control target
= control target key end

     0   :  { %s763_s9 = smov 0   ;;  %s765_s10 = smov 0   ;;  %s910_s0 = inlined_call_operand.vmem [shape: bf16[8,48], index: 0, kind: input, shape index: {}]   ;;  %s911_s1 = inlined_call_operand.vmem [shape: bf16[48,2048], index: 1, kind: input, shape index: {}]   ;;  %s912_s2 = inlined_call_operand.vmem [shape: bf16[8,2048], index: 2, kind: output, shape index: {}]  }
   0x1   :  { %s767_s11 = smov 0  }
   0x2 LB: > { %s648_s12 = sadd.s32 4294967295, %s745_s11   ;;  %s780_s13 = sadd.s32 1, %s745_s11   ;;  %s745_s11 = sphi %s767_s11, %s915_s11   ;;  %s741_s10 = sphi %s765_s10, %s914_s10   ;;  %s737_s9 = sphi %s763_s9, %s913_s9  }
   0x3   : > { %s37_s14 = ssub.s32 %s745_s11, %s780_s13  ;;  %s40_s15 = sadd.s32 1, %s741_s10 }
   0x4   : > { %p38_p0 = scmp.eq.s32.totalorder %s37_s14, 0  ;;  %p47_p1 = scmp.ne.s32.totalorder %s741_s10, %s737_s9 }
   0x5   : > { %p48_p2 = scmp.eq.s32.totalorder %s745_s11, 0  ;;  %p651_p4 = scmp.ge.s32.totalorder %s745_s11, 2 }
   0x6   : > { %s789_s16 = scalar_select %p38_p0, %s741_s10, %s40_s15  }
   0x7   : > { %p49_p3 = por %p48_p2, %p47_p1  ;;  %102 = sbr.rel (%p651_p4) target bundleno = 31 (0x1f), region = 20 }
   0xe   : > { %105 = sbr.rel (!%p49_p3) target bundleno = 31 (0x1f), region = 24  ;;  %s107_s17 = sand.u32 (%p49_p3), 1, %s741_s10  }
   0xf   : > { %s691_s18 = sshll.u32 (%p49_p3), %s745_s11, 5  ;;  %s696_s19 = smul.u32 (%p49_p3), 192, %s107_s17 }
  0x10   : > { %s797_s22 = scalar_lea.vmem (%p49_p3), %s911_s1, %s691_s18 }
  0x11   : > { %v125_v0 = vld [vmem:[%s797_s22] sm:$0xff] (%p49_p3)  ;;  %v127_v1 = vld [vmem:[%s797_s22 + $0x8] sm:$0xff] (%p49_p3)  ;;  %v129_v2 = vld [vmem:[%s797_s22 + $0x10] sm:$0xff] (%p49_p3)  ;;  %s805_s23 = scalar_lea.vmem (%p49_p3), [#allocation2], %s696_s19 }
  0x12   : > { %v131_v3 = vld [vmem:[%s797_s22 + $0x18] sm:$0xff] (%p49_p3)  ;;  %v133_v4 = vld [vmem:[%s797_s22 + $0x40] sm:$0xff] (%p49_p3)  ;;  %v135_v5 = vld [vmem:[%s797_s22 + $0x48] sm:$0xff] (%p49_p3)  ;;  %126 = vst [vmem:[%s805_s23] sm:$0xff] (%p49_p3), %v125_v0 }
  0x13   : > { %128 = vst [vmem:[%s805_s23 + $0x8] sm:$0xff] (%p49_p3), %v127_v1  ;;  %130 = vst [vmem:[%s805_s23 + $0x10] sm:$0xff] (%p49_p3), %v129_v2  ;;  %v137_v6 = vld [vmem:[%s797_s22 + $0x50] sm:$0xff] (%p49_p3)  ;;  %v139_v7 = vld [vmem:[%s797_s22 + $0x58] sm:$0xff] (%p49_p3) }
  0x14   : > { %132 = vst [vmem:[%s805_s23 + $0x18] sm:$0xff] (%p49_p3), %v131_v3  ;;  %134 = vst [vmem:[%s805_s23 + $0x20] sm:$0xff] (%p49_p3), %v133_v4  ;;  %v141_v8 = vld [vmem:[%s797_s22 + $0x80] sm:$0xff] (%p49_p3)  ;;  %v143_v9 = vld [vmem:[%s797_s22 + $0x88] sm:$0xff] (%p49_p3) }
  0x15   : > { %136 = vst [vmem:[%s805_s23 + $0x28] sm:$0xff] %v135_v5  ;;  %138 = vst [vmem:[%s805_s23 + $0x30] sm:$0xff] %v137_v6  ;;  %v145_v10 = vld [vmem:[%s797_s22 + $0x90] sm:$0xff]  ;;  %v147_v11 = vld [vmem:[%s797_s22 + $0x98] sm:$0xff] }
  0x16   : > { %140 = vst [vmem:[%s805_s23 + $0x38] sm:$0xff] %v139_v7  ;;  %142 = vst [vmem:[%s805_s23 + $0x40] sm:$0xff] %v141_v8  ;;  %v149_v12 = vld [vmem:[%s797_s22 + $0xc0] sm:$0xff]  ;;  %v151_v13 = vld [vmem:[%s797_s22 + $0xc8] sm:$0xff] }
  0x17   : > { %144 = vst [vmem:[%s805_s23 + $0x48] sm:$0xff] %v143_v9  ;;  %146 = vst [vmem:[%s805_s23 + $0x50] sm:$0xff] %v145_v10  ;;  %v153_v14 = vld [vmem:[%s797_s22 + $0xd0] sm:$0xff]  ;;  %v155_v15 = vld [vmem:[%s797_s22 + $0xd8] sm:$0xff] }
  0x18   : > { %148 = vst [vmem:[%s805_s23 + $0x58] sm:$0xff] %v147_v11  ;;  %150 = vst [vmem:[%s805_s23 + $0x60] sm:$0xff] %v149_v12  ;;  %v157_v16 = vld [vmem:[%s797_s22 + $0x100] sm:$0xff]  ;;  %v159_v17 = vld [vmem:[%s797_s22 + $0x108] sm:$0xff] }
  0x19   : > { %152 = vst [vmem:[%s805_s23 + $0x68] sm:$0xff] %v151_v13  ;;  %154 = vst [vmem:[%s805_s23 + $0x70] sm:$0xff] %v153_v14  ;;  %v161_v18 = vld [vmem:[%s797_s22 + $0x110] sm:$0xff]  ;;  %v163_v19 = vld [vmem:[%s797_s22 + $0x118] sm:$0xff] }
  0x1a   : > { %156 = vst [vmem:[%s805_s23 + $0x78] sm:$0xff] %v155_v15  ;;  %158 = vst [vmem:[%s805_s23 + $0x80] sm:$0xff] %v157_v16  ;;  %v165_v20 = vld [vmem:[%s797_s22 + $0x140] sm:$0xff]  ;;  %v167_v21 = vld [vmem:[%s797_s22 + $0x148] sm:$0xff] }
  0x1b   : > { %160 = vst [vmem:[%s805_s23 + $0x88] sm:$0xff] %v159_v17  ;;  %162 = vst [vmem:[%s805_s23 + $0x90] sm:$0xff] %v161_v18  ;;  %v169_v22 = vld [vmem:[%s797_s22 + $0x150] sm:$0xff]  ;;  %v171_v23 = vld [vmem:[%s797_s22 + $0x158] sm:$0xff] }
  0x1c   : > { %164 = vst [vmem:[%s805_s23 + $0x98] sm:$0xff] %v163_v19  ;;  %166 = vst [vmem:[%s805_s23 + $0xa0] sm:$0xff] %v165_v20 }
  0x1d   : > { %168 = vst [vmem:[%s805_s23 + $0xa8] sm:$0xff] %v167_v21  ;;  %170 = vst [vmem:[%s805_s23 + $0xb0] sm:$0xff] %v169_v22 }
  0x1e   : > { %172 = vst [vmem:[%s805_s23 + $0xb8] sm:$0xff] %v171_v23 }
  0x1f PF: > { %p654_p5 = scmp.ge.s32.totalorder %s745_s11, 1  ;;  %p177_p6 = scmp.lt.s32.totalorder %s745_s11, 3 }
  0x21   : > { %p178_p7 = pnand %p654_p5, %p177_p6 }
  0x22   : > { %s184_s24 = sand.u32 (!%p178_p7), 1, %s737_s9   ;;  %v747_v24 = vmov (!%p178_p7), 0   ;;  %v213_v59 = vld [vmem:[%s910_s0] sm:$0xf] (!%p178_p7)  ;;  %vm358_vm0 = vcmask (!%p178_p7), 392192   ;;  %s655_s29 = sshll.u32 (!%p178_p7), %s648_s12, 3 }
  0x23   : > { %181 = sbr.rel (%p178_p7) target bundleno = 287 (0x11f), region = 47  ;;  %394 = vmatprep.mubr.bf16.mxu0 (!%p178_p7), %v747_v24  ;;  %435 = vmatprep.mubr.bf16.mxu1 (!%p178_p7), %v747_v24  ;;  %p207_p8 = scmp.lt.s32.totalorder (!%p178_p7), %s655_s29, 15 }
  0x24   : > { %s697_s25 = smul.u32 (!%p178_p7), 192, %s184_s24 }
  0x26   : > { %s854_s26 = scalar_lea.vmem (!%p178_p7), [#allocation2], %s697_s25 }
  0x27   : > { %v214_v25 = vld [vmem:[%s854_s26] sm:$0xff] (!%p178_p7)  ;;  %v215_v27 = vld [vmem:[%s854_s26 + $0x8] sm:$0xff] (!%p178_p7)  ;;  %v216_v47 = vld [vmem:[%s854_s26 + $0x10] sm:$0xff] (!%p178_p7) }
  0x28   : > { %v218_v26 = vld [vmem:[%s854_s26 + $0x20] sm:$0xff] (!%p178_p7)  ;;  %v219_v29 = vld [vmem:[%s854_s26 + $0x28] sm:$0xff] (!%p178_p7)  ;;  %v220_v48 = vld [vmem:[%s854_s26 + $0x30] sm:$0xff] (!%p178_p7) }
  0x29   : > { %v658_v28 = vcombine.high (!%p178_p7), %v214_v25, %v218_v26  ;;  %v657_v30 = vcombine.low (!%p178_p7), %v214_v25, %v218_v26  ;;  %v222_v31 = vld [vmem:[%s854_s26 + $0x40] sm:$0xff] (!%p178_p7)  ;;  %v660_v33 = vcombine.high (!%p178_p7), %v215_v27, %v219_v29  ;;  %v659_v34 = vcombine.low (!%p178_p7), %v215_v27, %v219_v29  ;;  %v223_v36 = vld [vmem:[%s854_s26 + $0x48] sm:$0xff] (!%p178_p7)  ;;  %v217_v49 = vld [vmem:[%s854_s26 + $0x18] sm:$0xff] (!%p178_p7) }
  0x2a   : > { %v226_v32 = vld [vmem:[%s854_s26 + $0x60] sm:$0xff]  ;;  %v227_v37 = vld [vmem:[%s854_s26 + $0x68] sm:$0xff]  ;;  %v221_v50 = vld [vmem:[%s854_s26 + $0x38] sm:$0xff]  ;;  %v662_v53 = vcombine.high %v216_v47, %v220_v48  ;;  %v661_v60 = vcombine.low %v216_v47, %v220_v48  ;;  %s917_s29 = smov (!%p207_p8, %s655_s29), 15 }
  0x2b   : > { %v666_v35 = vcombine.high %v222_v31, %v226_v32  ;;  %v230_v38 = vld [vmem:[%s854_s26 + $0x80] sm:$0xff]  ;;  %362 = vmatprep.subr.bf16.mxu0 %v658_v28  ;;  %v668_v39 = vcombine.high %v223_v36, %v227_v37  ;;  %v231_v41 = vld [vmem:[%s854_s26 + $0x88] sm:$0xff]  ;;  %403 = vmatprep.subr.bf16.mxu1 %v660_v33  ;;  %v665_v43 = vcombine.low %v222_v31, %v226_v32  ;;  %v224_v55 = vld [vmem:[%s854_s26 + $0x50] sm:$0xff]  ;;  %s656_s30 = sshll.u32 %s917_s29, 2 }
  0x2c   : > { %v234_v40 = vld [vmem:[%s854_s26 + $0xa0] sm:$0xff]  ;;  %v235_v42 = vld [vmem:[%s854_s26 + $0xa8] sm:$0xff]  ;;  %363 = vmatpush1.bf16.msra.mxu0 %v657_v30  ;;  %404 = vmatpush1.bf16.msra.mxu1 %v659_v34  ;;  %v667_v44 = vcombine.low %v223_v36, %v227_v37  ;;  %v664_v54 = vcombine.high %v217_v49, %v221_v50  ;;  %v228_v56 = vld [vmem:[%s854_s26 + $0x70] sm:$0xff]  ;;  %v663_v61 = vcombine.low %v217_v49, %v221_v50  ;;  %s894_s5 = scalar_lea.vmem %s912_s2, %s656_s30 }
  0x2d   : > { %364 = vmatprep.subr.bf16.mxu0 %v666_v35  ;;  %v674_v45 = vcombine.high %v230_v38, %v234_v40  ;;  %405 = vmatprep.subr.bf16.mxu1 %v668_v39  ;;  %v676_v46 = vcombine.high %v231_v41, %v235_v42  ;;  %v673_v51 = vcombine.low %v230_v38, %v234_v40  ;;  %v225_v57 = vld [vmem:[%s854_s26 + $0x58] sm:$0xff]  ;;  %v232_v0 = vld [vmem:[%s854_s26 + $0x90] sm:$0xff] }
  0x2e   : > { %v675_v52 = vcombine.low %v231_v41, %v235_v42  ;;  %v229_v58 = vld [vmem:[%s854_s26 + $0x78] sm:$0xff]  ;;  %v670_v62 = vcombine.high %v224_v55, %v228_v56  ;;  %v236_v1 = vld [vmem:[%s854_s26 + $0xb0] sm:$0xff]  ;;  %v669_v4 = vcombine.low %v224_v55, %v228_v56 }
  0x2f   : > { %v672_v63 = vcombine.high %v225_v57, %v229_v58  ;;  %v233_v2 = vld [vmem:[%s854_s26 + $0x98] sm:$0xff]  ;;  %v671_v5 = vcombine.low %v225_v57, %v229_v58  ;;  %v678_v6 = vcombine.high %v232_v0, %v236_v1  ;;  %v677_v8 = vcombine.low %v232_v0, %v236_v1 }
  0x30   : > { %365 = vmatpush1.bf16.msra.mxu0 %v665_v43  ;;  %406 = vmatpush1.bf16.msra.mxu1 %v667_v44  ;;  %v237_v3 = vld [vmem:[%s854_s26 + $0xb8] sm:$0xff] }
  0x31   : > { %366 = vmatprep.subr.bf16.mxu0 %v674_v45  ;;  %407 = vmatprep.subr.bf16.mxu1 %v676_v46  ;;  %v680_v7 = vcombine.high %v233_v2, %v237_v3  ;;  %v679_v9 = vcombine.low %v233_v2, %v237_v3 }
  0x34   : > { %367 = vmatpush1.bf16.msra.mxu0 %v673_v51  ;;  %408 = vmatpush1.bf16.msra.mxu1 %v675_v52 }
  0x35   : > { %444 = vmatprep.subr.bf16.mxu0 %v662_v53  ;;  %485 = vmatprep.subr.bf16.mxu1 %v664_v54 }
  0x37   : > { %681 = vmatmul.mubr.msk.bf16.vlgmr.msra.gmra.mrb[0].mxu0 %vm358_vm0, %v213_v59  ;;  %682 = vmatmul.mubr.msk.bf16.vlgmr.msra.gmra.mrb[0].mxu1 %vm358_vm0, %v213_v59 }
  0x38   : > { %445 = vmatpush1.bf16.msra.mxu0 %v661_v60  ;;  %486 = vmatpush1.bf16.msra.mxu1 %v663_v61 }
  0x39   : > { %446 = vmatprep.subr.bf16.mxu0 %v670_v62  ;;  %487 = vmatprep.subr.bf16.mxu1 %v672_v63 }
  0x3a   : > { %476 = vmatprep.mubr.bf16.mxu0 %v747_v24  ;;  %517 = vmatprep.mubr.bf16.mxu1 %v747_v24 }
  0x3c   : > { %447 = vmatpush1.bf16.msra.mxu0 %v669_v4  ;;  %488 = vmatpush1.bf16.msra.mxu1 %v671_v5 }
  0x3d   : > { %448 = vmatprep.subr.bf16.mxu0 %v678_v6  ;;  %489 = vmatprep.subr.bf16.mxu1 %v680_v7 }
  0x40   : > { %449 = vmatpush1.bf16.msra.mxu0 %v677_v8  ;;  %490 = vmatpush1.bf16.msra.mxu1 %v679_v9 }
  0x43   : > { %683 = vmatmul.mubr.msk.bf16.vlgmr.msra.gmra.mrb[4].mxu0 %vm358_vm0, %v213_v59  ;;  %684 = vmatmul.mubr.msk.bf16.vlgmr.msra.gmra.mrb[4].mxu1 %vm358_vm0, %v213_v59 }
 0x10a   : > { %v396_v10 = vpop.f32.mrb[0].mxu0  ;;  %v437_v12 = vpop.f32.mrb[0].mxu1 }
 0x10b   : > { %vm526_vm1 = vcmp.gt.f32.partialorder %v396_v10, 0.0  ;;  %v534_v11 = vmul.f32 0.2, %v396_v10  ;;  %v398_v13 = vpop.f32.mrb[1].mxu0  ;;  %vm528_vm2 = vcmp.gt.f32.partialorder %v437_v12, 0.0  ;;  %v439_v17 = vpop.f32.mrb[1].mxu1 }
 0x10c   : > { %v536_v14 = vmul.f32 0.2, %v437_v12  ;;  %vm527_vm3 = vcmp.gt.f32.partialorder %v398_v13, 0.0  ;;  %v535_v15 = vmul.f32 0.2, %v398_v13  ;;  %v400_v18 = vpop.f32.mrb[2].mxu0 }
 0x10d   : > { %v542_v16 = vsel %vm526_vm1, %v396_v10, %v534_v11  ;;  %vm529_vm4 = vcmp.gt.f32.partialorder %v439_v17, 0.0  ;;  %v537_v21 = vmul.f32 0.2, %v439_v17  ;;  %v441_v22 = vpop.f32.mrb[2].mxu1  ;;  %v401_v23 = vpop.f32.mrb[3].mxu0 }
 0x10e   : > { %v544_v19 = vsel %vm528_vm2, %v437_v12, %v536_v14  ;;  %v543_v20 = vsel %vm527_vm3, %v398_v13, %v535_v15  ;;  %v442_v25 = vpop.f32.mrb[3].mxu1 }
 0x10f   : > { %v692_v24 = vpack.c.bf16 %v543_v20, %v542_v16  ;;  %v545_v26 = vsel %vm529_vm4, %v439_v17, %v537_v21 }
 0x110   : > { %v693_v27 = vpack.c.bf16 %v545_v26, %v544_v19 }
 0x111   : > { %582 = vst [vmem:[%s894_s5] sm:$0xff] %v692_v24 }
 0x112   : > { %583 = vst [vmem:[%s894_s5 + $0x8] sm:$0xff] %v693_v27 }
 0x116   : > { %v478_v28 = vpop.f32.mrb[4].mxu0  ;;  %v519_v30 = vpop.f32.mrb[4].mxu1 }
 0x117   : > { %vm530_vm5 = vcmp.gt.f32.partialorder %v478_v28, 0.0  ;;  %v538_v29 = vmul.f32 0.2, %v478_v28  ;;  %v480_v31 = vpop.f32.mrb[5].mxu0  ;;  %vm532_vm6 = vcmp.gt.f32.partialorder %v519_v30, 0.0  ;;  %v521_v35 = vpop.f32.mrb[5].mxu1 }
 0x118   : > { %v540_v32 = vmul.f32 0.2, %v519_v30  ;;  %vm531_vm7 = vcmp.gt.f32.partialorder %v480_v31, 0.0  ;;  %v539_v33 = vmul.f32 0.2, %v480_v31  ;;  %v482_v36 = vpop.f32.mrb[6].mxu0 }
 0x119   : > { %v546_v34 = vsel %vm530_vm5, %v478_v28, %v538_v29  ;;  %vm533_vm8 = vcmp.gt.f32.partialorder %v521_v35, 0.0  ;;  %v541_v39 = vmul.f32 0.2, %v521_v35  ;;  %v523_v40 = vpop.f32.mrb[6].mxu1  ;;  %v483_v41 = vpop.f32.mrb[7].mxu0 }
 0x11a   : > { %v548_v37 = vsel %vm532_vm6, %v519_v30, %v540_v32  ;;  %v547_v38 = vsel %vm531_vm7, %v480_v31, %v539_v33  ;;  %v524_v43 = vpop.f32.mrb[7].mxu1 }
 0x11b   : > { %v694_v42 = vpack.c.bf16 %v547_v38, %v546_v34  ;;  %v549_v44 = vsel %vm533_vm8, %v521_v35, %v541_v39 }
 0x11c   : > { %v695_v45 = vpack.c.bf16 %v549_v44, %v548_v37 }
 0x11d   : > { %584 = vst [vmem:[%s894_s5 + $0x10] sm:$0xff] %v694_v42 }
 0x11e   : > { %585 = vst [vmem:[%s894_s5 + $0x18] sm:$0xff] %v695_v45 }
 0x11f PF: > { %p9_p9 = scmp.ge.s32.totalorder %s780_s13, 4   ;;  %s913_s9 = smov %s741_s10 }
 0x120   : > { %s914_s10 = smov %s789_s16  ;;  %s915_s11 = smov %s780_s13 }
 0x121   :  { %11 = sbr.rel (!%p9_p9) target bundleno = 2 (0x2), region = 86 }

// kernel: discriminator_forward.5
= control target key start
LH: loop header
LB: loop body
LE: loop exit
PB: predicated region body
PF: predicated region fallthrough
CT: control target
= control target key end

     0   :  { %v543_v1 = vmov 0   ;;  %s692_s1 = inlined_call_operand.vmem [shape: bf16[128,512], index: 1, kind: input, shape index: {}]   ;;  %s693_s0 = inlined_call_operand.vmem [shape: bf16[16,128], index: 0, kind: input, shape index: {}]   ;;  %s694_s3 = inlined_call_operand.vmem [shape: f32[16,1], index: 3, kind: input, shape index: {}]   ;;  %s695_s2 = inlined_call_operand.vmem [shape: f32[16,1], index: 2, kind: input, shape index: {}]   ;;  %s696_s4 = inlined_call_operand.vmem [shape: bf16[16,512], index: 4, kind: output, shape index: {}]  }
   0x1   :  { %v490_v0 = vld [vmem:[%s692_s1 + $0x4] ss:$16 sps:$4 sm:$0xff]   ;;  %250 = vmatprep.mubr.bf16.mxu0 %v543_v1  ;;  %293 = vmatprep.mubr.bf16.mxu1 %v543_v1  ;;  %v492_v2 = vld [vmem:[%s692_s1 + $0xc] ss:$16 sps:$4 sm:$0xff]   ;;  %v494_v3 = vld [vmem:[%s692_s1] ss:$16 sps:$4 sm:$0xff]  }
   0x2   :  { %489 = vset.pattern.permute.xlu1 %v543_v1  ;;  %488 = vset.pattern.permute.xlu0 %v543_v1  ;;  %v495_v4 = vld [vmem:[%s692_s1 + $0x8] ss:$16 sps:$4 sm:$0xff]   ;;  %v496_v5 = vld [vmem:[%s692_s1 + $0x24] ss:$16 sps:$4 sm:$0xff]   ;;  %v498_v6 = vld [vmem:[%s692_s1 + $0x2c] ss:$16 sps:$4 sm:$0xff]  }
   0x3   :  { %218 = vmatprep.subr.bf16.mxu0 %v490_v0  ;;  %261 = vmatprep.subr.bf16.mxu1 %v492_v2  ;;  %v500_v7 = vld [vmem:[%s692_s1 + $0x20] ss:$16 sps:$4 sm:$0xff]   ;;  %v501_v8 = vld [vmem:[%s692_s1 + $0x28] ss:$16 sps:$4 sm:$0xff]   ;;  %v502_v9 = vld [vmem:[%s692_s1 + $0x44] ss:$16 sps:$4 sm:$0xff]  }
   0x4   :  { %219 = vmatpush1.bf16.msra.mxu0 %v494_v3  ;;  %262 = vmatpush1.bf16.msra.mxu1 %v495_v4  ;;  %v504_v10 = vld [vmem:[%s692_s1 + $0x4c] ss:$16 sps:$4 sm:$0xff]   ;;  %v506_v11 = vld [vmem:[%s692_s1 + $0x40] ss:$16 sps:$4 sm:$0xff]   ;;  %v507_v12 = vld [vmem:[%s692_s1 + $0x48] ss:$16 sps:$4 sm:$0xff]  }
   0x5   :  { %220 = vmatprep.subr.bf16.mxu0 %v496_v5  ;;  %263 = vmatprep.subr.bf16.mxu1 %v498_v6  ;;  %v508_v13 = vld [vmem:[%s692_s1 + $0x64] ss:$16 sps:$4 sm:$0xff]   ;;  %v510_v14 = vld [vmem:[%s692_s1 + $0x6c] ss:$16 sps:$4 sm:$0xff]   ;;  %v512_v15 = vld [vmem:[%s692_s1 + $0x60] ss:$16 sps:$4 sm:$0xff]  }
   0x6   :  { %v513_v16 = vld [vmem:[%s692_s1 + $0x68] ss:$16 sps:$4 sm:$0xff]   ;;  %v514_v17 = vld [vmem:[%s692_s1 + $0x84] ss:$16 sps:$4 sm:$0xff]   ;;  %v516_v18 = vld [vmem:[%s692_s1 + $0x8c] ss:$16 sps:$4 sm:$0xff]  }
   0x7   :  { %v518_v19 = vld [vmem:[%s692_s1 + $0x80] ss:$16 sps:$4 sm:$0xff]   ;;  %v519_v20 = vld [vmem:[%s692_s1 + $0x88] ss:$16 sps:$4 sm:$0xff]   ;;  %v520_v21 = vld [vmem:[%s692_s1 + $0xa4] ss:$16 sps:$4 sm:$0xff]  }
   0x8   :  { %221 = vmatpush1.bf16.msra.mxu0 %v500_v7  ;;  %264 = vmatpush1.bf16.msra.mxu1 %v501_v8  ;;  %v522_v22 = vld [vmem:[%s692_s1 + $0xac] ss:$16 sps:$4 sm:$0xff]   ;;  %v524_v23 = vld [vmem:[%s692_s1 + $0xa0] ss:$16 sps:$4 sm:$0xff]   ;;  %v525_v24 = vld [vmem:[%s692_s1 + $0xa8] ss:$16 sps:$4 sm:$0xff]  }
   0x9   :  { %222 = vmatprep.subr.bf16.mxu0 %v502_v9  ;;  %265 = vmatprep.subr.bf16.mxu1 %v504_v10  ;;  %v526_v25 = vld [vmem:[%s692_s1 + $0xc4] ss:$16 sps:$4 sm:$0xff]   ;;  %v528_v26 = vld [vmem:[%s692_s1 + $0xcc] ss:$16 sps:$4 sm:$0xff]   ;;  %v530_v27 = vld [vmem:[%s692_s1 + $0xc0] ss:$16 sps:$4 sm:$0xff]  }
   0xa   :  { %v531_v28 = vld [vmem:[%s692_s1 + $0xc8] ss:$16 sps:$4 sm:$0xff]   ;;  %v532_v29 = vld [vmem:[%s692_s1 + $0xe4] ss:$16 sps:$4 sm:$0xff]   ;;  %v534_v30 = vld [vmem:[%s692_s1 + $0xec] ss:$16 sps:$4 sm:$0xff]  }
   0xb   :  { %v536_v31 = vld [vmem:[%s692_s1 + $0xe0] ss:$16 sps:$4 sm:$0xff]   ;;  %v537_v32 = vld [vmem:[%s692_s1 + $0xe8] ss:$16 sps:$4 sm:$0xff]  }
   0xc   :  { %223 = vmatpush1.bf16.msra.mxu0 %v506_v11  ;;  %266 = vmatpush1.bf16.msra.mxu1 %v507_v12  ;;  %v538_v33 = vld [vmem:[%s693_s0] sm:$0xff]  }
   0xd   :  { %224 = vmatprep.subr.bf16.mxu0 %v508_v13  ;;  %267 = vmatprep.subr.bf16.mxu1 %v510_v14  ;;  %v370_v10 = vld [vmem:[%s694_s3] sm:$0xff] }
  0x10   :  { %225 = vmatpush1.bf16.msra.mxu0 %v512_v15  ;;  %268 = vmatpush1.bf16.msra.mxu1 %v513_v16 }
  0x11   :  { %226 = vmatprep.subr.bf16.mxu0 %v514_v17  ;;  %269 = vmatprep.subr.bf16.mxu1 %v516_v18  ;;  %v344_v17 = vld [vmem:[%s695_s2] sm:$0xff] }
  0x14   :  { %227 = vmatpush1.bf16.msra.mxu0 %v518_v19  ;;  %270 = vmatpush1.bf16.msra.mxu1 %v519_v20  ;;  %v345_v20 = vld [vmem:[%s695_s2 + $0x8] sm:$0xff] }
  0x15   :  { %228 = vmatprep.subr.bf16.mxu0 %v520_v21  ;;  %271 = vmatprep.subr.bf16.mxu1 %v522_v22 }
  0x18   :  { %229 = vmatpush1.bf16.msra.mxu0 %v524_v23  ;;  %272 = vmatpush1.bf16.msra.mxu1 %v525_v24  ;;  %v371_v23 = vld [vmem:[%s694_s3 + $0x8] sm:$0xff] }
  0x19   :  { %230 = vmatprep.subr.bf16.mxu0 %v526_v25  ;;  %273 = vmatprep.subr.bf16.mxu1 %v528_v26 }
  0x1c   :  { %231 = vmatpush1.bf16.msra.mxu0 %v530_v27  ;;  %274 = vmatpush1.bf16.msra.mxu1 %v531_v28 }
  0x1d   :  { %232 = vmatprep.subr.bf16.mxu0 %v532_v29  ;;  %275 = vmatprep.subr.bf16.mxu1 %v534_v30 }
  0x20   :  { %233 = vmatpush1.bf16.msra.mxu0 %v536_v31  ;;  %276 = vmatpush1.bf16.msra.mxu1 %v537_v32 }
  0x23   :  { %251 = vmatmul.mubr.bf16.vlgmr.msra.gmra.mrb[0].mxu0 %v538_v33  ;;  %294 = vmatmul.mubr.bf16.vlgmr.msra.gmra.mrb[0].mxu1 %v538_v33 }
  0xf6   :  { %v252_v34 = vpop.f32.mrb[0].mxu0  ;;  %v295_v35 = vpop.f32.mrb[0].mxu1 }
  0xf7   :  { %v254_v36 = vpop.f32.mrb[1].mxu0  ;;  %v297_v37 = vpop.f32.mrb[1].mxu1 }
  0xf8   :  { %v304_v38 = vadd.f32 %v254_v36, %v252_v34  ;;  %v256_v39 = vpop.f32.mrb[2].mxu0  ;;  %v299_v40 = vpop.f32.mrb[2].mxu1 }
  0xf9   :  { %v258_v41 = vpop.f32.mrb[3].mxu0  ;;  %v301_v42 = vpop.f32.mrb[3].mxu1 }
  0xfa   :  { %v309_v43 = vadd.f32 %v258_v41, %v256_v39  ;;  %v305_v44 = vadd.f32 %v304_v38, %v295_v35 }
  0xfc   :  { %v310_v45 = vadd.f32 %v309_v43, %v299_v40  ;;  %v306_v46 = vadd.f32 %v305_v44, %v297_v37 }
  0xfe   :  { %v311_v47 = vadd.f32 %v310_v45, %v301_v42  ;;  %307 = vadd.xlane.f32.xlu0 %v306_v46 }
 0x102   :  { %312 = vadd.xlane.f32.xlu0 %v311_v47 }
 0x18b   :  { %v308_v48 = vpop.xlane.xlu0 %307 }
 0x18c   :  { %v314_v49 = vmul.f32 0.001953125, %v308_v48 }
 0x18e   :  { %v316_v50 = vsub.f32 %v252_v34, %v314_v49  ;;  %v317_v51 = vsub.f32 %v254_v36, %v314_v49  ;;  %v318_v52 = vsub.f32 %v295_v35, %v314_v49  ;;  %v319_v54 = vsub.f32 %v297_v37, %v314_v49 }
 0x18f   :  { %v313_v53 = vpop.xlane.xlu0 %312 }
 0x190   :  { %v315_v55 = vmul.f32 0.001953125, %v313_v53  ;;  %v324_v56 = vmul.f32 %v316_v50, %v316_v50  ;;  %v325_v57 = vmul.f32 %v317_v51, %v317_v51  ;;  %v326_v58 = vmul.f32 %v318_v52, %v318_v52 }
 0x191   :  { %v327_v63 = vmul.f32 %v319_v54, %v319_v54 }
 0x192   :  { %v320_v59 = vsub.f32 %v256_v39, %v315_v55  ;;  %v321_v60 = vsub.f32 %v258_v41, %v315_v55  ;;  %v332_v61 = vadd.f32 %v325_v57, %v324_v56  ;;  %v322_v62 = vsub.f32 %v299_v40, %v315_v55 }
 0x193   :  { %v323_v1 = vsub.f32 %v301_v42, %v315_v55 }
 0x194   :  { %v333_v0 = vadd.f32 %v332_v61, %v326_v58  ;;  %v328_v2 = vmul.f32 %v320_v59, %v320_v59  ;;  %v329_v3 = vmul.f32 %v321_v60, %v321_v60  ;;  %v330_v5 = vmul.f32 %v322_v62, %v322_v62 }
 0x195   :  { %v331_v7 = vmul.f32 %v323_v1, %v323_v1 }
 0x196   :  { %v334_v4 = vadd.f32 %v333_v0, %v327_v63  ;;  %v337_v6 = vadd.f32 %v329_v3, %v328_v2 }
 0x198   :  { %335 = vadd.xlane.f32.xlu1 %v334_v4  ;;  %v338_v8 = vadd.f32 %v337_v6, %v330_v5 }
 0x19a   :  { %v339_v9 = vadd.f32 %v338_v8, %v331_v7 }
 0x19c   :  { %340 = vadd.xlane.f32.xlu1 %v339_v9 }
 0x1ad   :  { %374 = vperm.xlu1 %489, %v370_v10  }
 0x225   :  { %v336_v11 = vpop.xlane.xlu1 %335 }
 0x226   :  { %v342_v12 = vmul.f32 0.001953125, %v336_v11 }
 0x228   :  { %v346_v13 = vadd.f32 1e-05, %v342_v12 }
 0x229   :  { %v341_v14 = vpop.xlane.xlu1 %340 }
 0x22a   :  { %539 = vrsqrt.f32 %v346_v13  ;;  %v343_v15 = vmul.f32 0.001953125, %v341_v14 }
 0x22c   :  { %v347_v16 = vadd.f32 1e-05, %v343_v15 }
 0x22d   :  { %v375_v24 = vpop.permute.xlu1 %374 }
 0x22e   :  { %541 = vrsqrt.f32 %v347_v16 }
 0x234   :  { %v540_v18 = vpop.eup %539 }
 0x235   :  { %v350_v19 = vmul.f32 %v540_v18, %v344_v17 }
 0x237   :  { %354 = vperm.xlu0 %488, %v350_v19  }
 0x238   :  { %v542_v21 = vpop.eup %541 }
 0x239   :  { %v351_v22 = vmul.f32 %v542_v21, %v345_v20 }
 0x23b   :  { %359 = vperm.xlu1 %489, %v351_v22  }
 0x23f   :  { %379 = vperm.xlu1 %489, %v371_v23  }
 0x2b6   :  { %v355_v25 = vpop.permute.xlu0 %354 }
 0x2b7   :  { %v362_v26 = vmul.f32 %v355_v25, %v316_v50  ;;  %v363_v27 = vmul.f32 %v355_v25, %v317_v51  ;;  %v364_v28 = vmul.f32 %v355_v25, %v318_v52  ;;  %v365_v29 = vmul.f32 %v355_v25, %v319_v54 }
 0x2b9   :  { %v382_v30 = vadd.f32 %v375_v24, %v362_v26  ;;  %v383_v31 = vadd.f32 %v375_v24, %v363_v27  ;;  %v384_v32 = vadd.f32 %v375_v24, %v364_v28  ;;  %v385_v33 = vadd.f32 %v375_v24, %v365_v29 }
 0x2ba   :  { %v360_v34 = vpop.permute.xlu1 %359 }
 0x2bb   :  { %vm390_vm0 = vcmp.gt.f32.partialorder %v382_v30, 0.0  ;;  %vm391_vm1 = vcmp.gt.f32.partialorder %v383_v31, 0.0  ;;  %vm392_vm2 = vcmp.gt.f32.partialorder %v384_v32, 0.0  ;;  %vm393_vm3 = vcmp.gt.f32.partialorder %v385_v33, 0.0 }
 0x2bc   :  { %v398_v35 = vmul.f32 0.2, %v382_v30  ;;  %v399_v36 = vmul.f32 0.2, %v383_v31  ;;  %v400_v37 = vmul.f32 0.2, %v384_v32  ;;  %v366_v39 = vmul.f32 %v360_v34, %v320_v59 }
 0x2bd   :  { %v401_v38 = vmul.f32 0.2, %v385_v33  ;;  %v367_v40 = vmul.f32 %v360_v34, %v321_v60  ;;  %v368_v41 = vmul.f32 %v360_v34, %v322_v62  ;;  %v369_v45 = vmul.f32 %v360_v34, %v323_v1 }
 0x2be   :  { %v406_v42 = vsel %vm390_vm0, %v382_v30, %v398_v35  ;;  %v407_v43 = vsel %vm391_vm1, %v383_v31, %v399_v36  ;;  %v408_v44 = vsel %vm392_vm2, %v384_v32, %v400_v37  ;;  %v380_v46 = vpop.permute.xlu1 %379 }
 0x2bf   :  { %v409_v47 = vsel %vm393_vm3, %v385_v33, %v401_v38  ;;  %v483_v48 = vpack.c.bf16 %v407_v43, %v406_v42  ;;  %v386_v49 = vadd.f32 %v380_v46, %v366_v39  ;;  %v387_v50 = vadd.f32 %v380_v46, %v367_v40 }
 0x2c0   :  { %v484_v51 = vpack.c.bf16 %v409_v47, %v408_v44  ;;  %v388_v52 = vadd.f32 %v380_v46, %v368_v41  ;;  %v389_v53 = vadd.f32 %v380_v46, %v369_v45 }
 0x2c1   :  { %438 = vst [vmem:[%s696_s4] sm:$0xff] %v483_v48  ;;  %vm394_vm4 = vcmp.gt.f32.partialorder %v386_v49, 0.0  ;;  %vm395_vm5 = vcmp.gt.f32.partialorder %v387_v50, 0.0  ;;  %v402_v54 = vmul.f32 0.2, %v386_v49  ;;  %v403_v55 = vmul.f32 0.2, %v387_v50 }
 0x2c2   :  { %439 = vst [vmem:[%s696_s4 + $0x8] sm:$0xff] %v484_v51  ;;  %vm396_vm6 = vcmp.gt.f32.partialorder %v388_v52, 0.0  ;;  %vm397_vm7 = vcmp.gt.f32.partialorder %v389_v53, 0.0  ;;  %v404_v56 = vmul.f32 0.2, %v388_v52 }
 0x2c3   :  { %v405_v57 = vmul.f32 0.2, %v389_v53  ;;  %v410_v58 = vsel %vm394_vm4, %v386_v49, %v402_v54  ;;  %v411_v59 = vsel %vm395_vm5, %v387_v50, %v403_v55 }
 0x2c4   :  { %v412_v60 = vsel %vm396_vm6, %v388_v52, %v404_v56  ;;  %v485_v62 = vpack.c.bf16 %v411_v59, %v410_v58 }
 0x2c5   :  { %v413_v61 = vsel %vm397_vm7, %v389_v53, %v405_v57 }
 0x2c6   :  { %v486_v63 = vpack.c.bf16 %v413_v61, %v412_v60  ;;  %440 = vst [vmem:[%s696_s4 + $0x10] sm:$0xff] %v485_v62 }
 0x2c8   :  { %441 = vst [vmem:[%s696_s4 + $0x18] sm:$0xff] %v486_v63 }

// kernel: discriminator_forward.6
= control target key start
LH: loop header
LB: loop body
LE: loop exit
PB: predicated region body
PF: predicated region fallthrough
CT: control target
= control target key end

     0   :  { %v471_v48 = vmov 0   ;;  %s607_s1 = inlined_call_operand.vmem [shape: bf16[256,128], index: 1, kind: input, shape index: {}]   ;;  %s608_s0 = inlined_call_operand.vmem [shape: bf16[32,256], index: 0, kind: input, shape index: {}]   ;;  %s609_s3 = inlined_call_operand.vmem [shape: f32[32,1], index: 3, kind: input, shape index: {}]   ;;  %s610_s2 = inlined_call_operand.vmem [shape: f32[32,1], index: 2, kind: input, shape index: {}]   ;;  %s611_s4 = inlined_call_operand.vmem [shape: bf16[32,128], index: 4, kind: output, shape index: {}]  }
   0x1   :  { %v441_v0 = vld [vmem:[%s607_s1 + $0x40] sm:$0xff]   ;;  %v443_v2 = vld [vmem:[%s607_s1 + $0x48] sm:$0xff]   ;;  %v445_v4 = vld [vmem:[%s607_s1 + $0x50] sm:$0xff]   ;;  %440 = vset.pattern.permute.xlu1 %v471_v48  ;;  %439 = vset.pattern.permute.xlu0 %v471_v48 }
   0x2   :  { %v442_v1 = vld [vmem:[%s607_s1] sm:$0xff]   ;;  %394 = vmatprep.subr.bf16.mxu0 %v441_v0  ;;  %422 = vmatprep.subr.bf16.mxu1 %v441_v0  ;;  %v444_v3 = vld [vmem:[%s607_s1 + $0x8] sm:$0xff]   ;;  %v446_v5 = vld [vmem:[%s607_s1 + $0x10] sm:$0xff]  }
   0x3   :  { %395 = vmatpush3.bf16.msra.mxu0 %v442_v1  ;;  %430 = vmatpush3.bf16.msra.mxu1 %v442_v1  ;;  %v447_v6 = vld [vmem:[%s607_s1 + $0x58] sm:$0xff]   ;;  %v449_v8 = vld [vmem:[%s607_s1 + $0x60] sm:$0xff]   ;;  %v451_v10 = vld [vmem:[%s607_s1 + $0x68] sm:$0xff]  }
   0x4   :  { %396 = vmatprep.subr.bf16.mxu0 %v443_v2  ;;  %423 = vmatprep.subr.bf16.mxu1 %v443_v2  ;;  %v448_v7 = vld [vmem:[%s607_s1 + $0x18] sm:$0xff]   ;;  %v450_v9 = vld [vmem:[%s607_s1 + $0x20] sm:$0xff]   ;;  %v452_v13 = vld [vmem:[%s607_s1 + $0x28] sm:$0xff]  }
   0x5   :  { %v459_v11 = vld [vmem:[%s608_s0 + $0x4] ss:$8 sps:$4 sm:$0xff]   ;;  %v462_v12 = vld [vmem:[%s608_s0 + $0x14] ss:$8 sps:$4 sm:$0xff]   ;;  %v457_v18 = vld [vmem:[%s608_s0] ss:$8 sps:$4 sm:$0xff]  }
   0x6   :  { %v453_v14 = vld [vmem:[%s607_s1 + $0x70] sm:$0xff]   ;;  %202 = vmatprep.mubr.bf16.mxu0 %v459_v11  ;;  %210 = vmatprep.mubr.bf16.mxu1 %v462_v12  ;;  %v455_v16 = vld [vmem:[%s607_s1 + $0x78] sm:$0xff]   ;;  %v291_v49 = vld [vmem:[%s609_s3] sm:$0xff] }
   0x7   :  { %397 = vmatpush3.bf16.msra.mxu0 %v444_v3  ;;  %431 = vmatpush3.bf16.msra.mxu1 %v444_v3  ;;  %v454_v15 = vld [vmem:[%s607_s1 + $0x30] sm:$0xff]   ;;  %v456_v17 = vld [vmem:[%s607_s1 + $0x38] sm:$0xff]   ;;  %v292_v50 = vld [vmem:[%s609_s3 + $0x8] sm:$0xff] }
   0x8   :  { %398 = vmatprep.subr.bf16.mxu0 %v445_v4  ;;  %424 = vmatprep.subr.bf16.mxu1 %v445_v4  ;;  %v460_v19 = vld [vmem:[%s608_s0 + $0x10] ss:$8 sps:$4 sm:$0xff]   ;;  %v251_v0 = vld [vmem:[%s610_s2] sm:$0xff] }
   0x9   :  { %v293_v51 = vld [vmem:[%s609_s3 + $0x10] sm:$0xff]  ;;  %v294_v12 = vld [vmem:[%s609_s3 + $0x18] sm:$0xff] }
   0xa   :  { %v253_v3 = vld [vmem:[%s610_s2 + $0x10] sm:$0xff] }
   0xb   :  { %399 = vmatpush3.bf16.msra.mxu0 %v446_v5  ;;  %432 = vmatpush3.bf16.msra.mxu1 %v446_v5 }
   0xc   :  { %400 = vmatprep.subr.bf16.mxu0 %v447_v6  ;;  %425 = vmatprep.subr.bf16.mxu1 %v447_v6 }
   0xf   :  { %401 = vmatpush3.bf16.msra.mxu0 %v448_v7  ;;  %433 = vmatpush3.bf16.msra.mxu1 %v448_v7  ;;  %v252_v7 = vld [vmem:[%s610_s2 + $0x8] sm:$0xff] }
  0x10   :  { %402 = vmatprep.subr.bf16.mxu0 %v449_v8  ;;  %426 = vmatprep.subr.bf16.mxu1 %v449_v8 }
  0x13   :  { %403 = vmatpush3.bf16.msra.mxu0 %v450_v9  ;;  %434 = vmatpush3.bf16.msra.mxu1 %v450_v9 }
  0x14   :  { %404 = vmatprep.subr.bf16.mxu0 %v451_v10  ;;  %427 = vmatprep.subr.bf16.mxu1 %v451_v10  ;;  %v254_v10 = vld [vmem:[%s610_s2 + $0x18] sm:$0xff] }
  0x17   :  { %405 = vmatpush3.bf16.msra.mxu0 %v452_v13  ;;  %435 = vmatpush3.bf16.msra.mxu1 %v452_v13 }
  0x18   :  { %406 = vmatprep.subr.bf16.mxu0 %v453_v14  ;;  %428 = vmatprep.subr.bf16.mxu1 %v453_v14 }
  0x1b   :  { %407 = vmatpush3.bf16.msra.mxu0 %v454_v15  ;;  %436 = vmatpush3.bf16.msra.mxu1 %v454_v15 }
  0x1c   :  { %408 = vmatprep.subr.bf16.mxu0 %v455_v16  ;;  %429 = vmatprep.subr.bf16.mxu1 %v455_v16 }
  0x1f   :  { %409 = vmatpush3.bf16.msra.mxu0 %v456_v17  ;;  %437 = vmatpush3.bf16.msra.mxu1 %v456_v17 }
  0x22   :  { %203 = vmatmul.mubr.bf16.vlgmr.msra.gmra.mrb[0].mxu0 %v457_v18  ;;  %211 = vmatmul.mubr.bf16.vlgmr.msra.gmra.mrb[0].mxu1 %v460_v19 }
  0xf5   :  { %v410_v20 = vpop.f32.mrb[0].mxu0  ;;  %v416_v21 = vpop.f32.mrb[0].mxu1 }
  0xf6   :  { %v411_v22 = vpop.f32.mrb[1].mxu0  ;;  %v417_v23 = vpop.f32.mrb[1].mxu1 }
  0xf7   :  { %v412_v24 = vadd.f32 %v411_v22, %v410_v20  ;;  %v418_v25 = vadd.f32 %v417_v23, %v416_v21  ;;  %v413_v26 = vpop.f32.mrb[2].mxu0  ;;  %v419_v27 = vpop.f32.mrb[2].mxu1 }
  0xf8   :  { %v414_v28 = vpop.f32.mrb[3].mxu0  ;;  %v420_v29 = vpop.f32.mrb[3].mxu1 }
  0xf9   :  { %v415_v30 = vadd.f32 %v414_v28, %v413_v26  ;;  %v421_v31 = vadd.f32 %v420_v29, %v419_v27  ;;  %223 = vadd.xlane.f32.xlu1 %v418_v25  ;;  %219 = vadd.xlane.f32.xlu0 %v412_v24 }
  0xfd   :  { %225 = vadd.xlane.f32.xlu1 %v421_v31  ;;  %221 = vadd.xlane.f32.xlu0 %v415_v30 }
 0x186   :  { %v224_v32 = vpop.xlane.xlu1 %223  ;;  %v220_v33 = vpop.xlane.xlu0 %219 }
 0x187   :  { %v229_v34 = vmul.f32 0.0078125, %v224_v32  ;;  %v227_v35 = vmul.f32 0.0078125, %v220_v33 }
 0x189   :  { %v557_v36 = vsub.f32 %v412_v24, %v227_v35  ;;  %v559_v39 = vsub.f32 %v418_v25, %v229_v34 }
 0x18a   :  { %v226_v37 = vpop.xlane.xlu1 %225  ;;  %v222_v38 = vpop.xlane.xlu0 %221 }
 0x18b   :  { %v230_v40 = vmul.f32 0.0078125, %v226_v37  ;;  %v228_v41 = vmul.f32 0.0078125, %v222_v38  ;;  %v235_v42 = vmul.f32 %v557_v36, %v557_v36  ;;  %v237_v45 = vmul.f32 %v559_v39, %v559_v39 }
 0x18d   :  { %v563_v43 = vsub.f32 %v415_v30, %v228_v41  ;;  %239 = vadd.xlane.f32.xlu0 %v235_v42  ;;  %v565_v44 = vsub.f32 %v421_v31, %v230_v40 }
 0x18f   :  { %v236_v46 = vmul.f32 %v563_v43, %v563_v43  ;;  %v238_v47 = vmul.f32 %v565_v44, %v565_v44 }
 0x191   :  { %243 = vadd.xlane.f32.xlu0 %v237_v45  ;;  %241 = vadd.xlane.f32.xlu1 %v236_v46 }
 0x195   :  { %245 = vadd.xlane.f32.xlu1 %v238_v47 }
 0x1a6   :  { %297 = vperm.xlu1 %440, %v291_v49  }
 0x1aa   :  { %302 = vperm.xlu1 %440, %v292_v50  }
 0x1ae   :  { %307 = vperm.xlu1 %440, %v293_v51  }
 0x21a   :  { %v240_v52 = vpop.xlane.xlu0 %239 }
 0x21b   :  { %v247_v53 = vmul.f32 0.0078125, %v240_v52 }
 0x21d   :  { %v255_v54 = vadd.f32 1e-05, %v247_v53 }
 0x21e   :  { %v242_v55 = vpop.xlane.xlu1 %241  ;;  %v244_v56 = vpop.xlane.xlu0 %243 }
 0x21f   :  { %463 = vrsqrt.f32 %v255_v54  ;;  %v248_v57 = vmul.f32 0.0078125, %v242_v55  ;;  %v249_v58 = vmul.f32 0.0078125, %v244_v56 }
 0x221   :  { %v257_v59 = vadd.f32 1e-05, %v249_v58  ;;  %v256_v60 = vadd.f32 1e-05, %v248_v57 }
 0x222   :  { %v246_v61 = vpop.xlane.xlu1 %245 }
 0x223   :  { %v250_v62 = vmul.f32 0.0078125, %v246_v61  ;;  %465 = vrsqrt.f32 %v257_v59 }
 0x224   :  { %467 = vrsqrt.f32 %v256_v60 }
 0x225   :  { %v258_v63 = vadd.f32 1e-05, %v250_v62 }
 0x226   :  { %v298_v13 = vpop.permute.xlu1 %297 }
 0x227   :  { %469 = vrsqrt.f32 %v258_v63 }
 0x229   :  { %v464_v1 = vpop.eup %463 }
 0x22a   :  { %v263_v2 = vmul.f32 %v464_v1, %v251_v0  ;;  %v303_v14 = vpop.permute.xlu1 %302 }
 0x22c   :  { %269 = vperm.xlu0 %439, %v263_v2  }
 0x22d   :  { %v466_v4 = vpop.eup %465 }
 0x22e   :  { %v265_v5 = vmul.f32 %v466_v4, %v253_v3  ;;  %v468_v6 = vpop.eup %467  ;;  %v308_v15 = vpop.permute.xlu1 %307 }
 0x22f   :  { %v264_v8 = vmul.f32 %v468_v6, %v252_v7 }
 0x230   :  { %279 = vperm.xlu1 %440, %v265_v5  }
 0x231   :  { %v470_v9 = vpop.eup %469 }
 0x232   :  { %v266_v11 = vmul.f32 %v470_v9, %v254_v10 }
 0x234   :  { %274 = vperm.xlu1 %440, %v264_v8  }
 0x238   :  { %284 = vperm.xlu1 %440, %v266_v11  }
 0x23c   :  { %312 = vperm.xlu1 %440, %v294_v12  }
 0x2ab   :  { %v270_v16 = vpop.permute.xlu0 %269 }
 0x2ac   :  { %v287_v17 = vmul.f32 %v270_v16, %v557_v36 }
 0x2ae   :  { %v315_v19 = vadd.f32 %v298_v13, %v287_v17 }
 0x2af   :  { %v280_v18 = vpop.permute.xlu1 %279 }
 0x2b0   :  { %v289_v21 = vmul.f32 %v280_v18, %v559_v39  ;;  %v323_v23 = vmul.f32 0.2, %v315_v19  ;;  %vm319_vm0 = vcmp.gt.f32.partialorder %v315_v19, 0.0 }
 0x2b2   :  { %v317_v26 = vadd.f32 %v308_v15, %v289_v21  ;;  %v327_v28 = vsel %vm319_vm0, %v315_v19, %v323_v23 }
 0x2b3   :  { %v275_v20 = vpop.permute.xlu1 %274 }
 0x2b4   :  { %v288_v22 = vmul.f32 %v275_v20, %v563_v43  ;;  %v325_v33 = vmul.f32 0.2, %v317_v26  ;;  %vm321_vm2 = vcmp.gt.f32.partialorder %v317_v26, 0.0 }
 0x2b6   :  { %v316_v24 = vadd.f32 %v303_v14, %v288_v22  ;;  %v329_v36 = vsel %vm321_vm2, %v317_v26, %v325_v33 }
 0x2b7   :  { %v285_v25 = vpop.permute.xlu1 %284 }
 0x2b8   :  { %vm320_vm1 = vcmp.gt.f32.partialorder %v316_v24, 0.0  ;;  %v324_v27 = vmul.f32 0.2, %v316_v24  ;;  %v290_v30 = vmul.f32 %v285_v25, %v565_v44 }
 0x2ba   :  { %v328_v29 = vsel %vm320_vm1, %v316_v24, %v324_v27 }
 0x2bb   :  { %v386_v31 = vpack.c.bf16 %v328_v29, %v327_v28  ;;  %v313_v32 = vpop.permute.xlu1 %312 }
 0x2bc   :  { %v318_v34 = vadd.f32 %v313_v32, %v290_v30 }
 0x2bd   :  { %387 = vst [vmem:[%s611_s4] sm:$0xff] %v386_v31  }
 0x2be   :  { %vm322_vm3 = vcmp.gt.f32.partialorder %v318_v34, 0.0  ;;  %v326_v35 = vmul.f32 0.2, %v318_v34 }
 0x2c0   :  { %v330_v37 = vsel %vm322_vm3, %v318_v34, %v326_v35 }
 0x2c1   :  { %v391_v38 = vpack.c.bf16 %v330_v37, %v329_v36 }
 0x2c3   :  { %393 = vst [vmem:[%s611_s4 + $0x8] sm:$0xff] %v391_v38  }

// kernel: discriminator_forward.7
= control target key start
LH: loop header
LB: loop body
LE: loop exit
PB: predicated region body
PF: predicated region fallthrough
CT: control target
= control target key end

     0   :  { %s1582_s0 = inlined_call_operand.vmem [shape: bf16[64,512], index: 0, kind: input, shape index: {}]   ;;  %s1583_s1 = inlined_call_operand.vmem [shape: bf16[512,32], index: 1, kind: input, shape index: {}]   ;;  %s1584_s2 = inlined_call_operand.vmem [shape: f32[64,1], index: 2, kind: input, shape index: {}]   ;;  %s1585_s3 = inlined_call_operand.vmem [shape: f32[64,1], index: 3, kind: input, shape index: {}]   ;;  %s1586_s4 = inlined_call_operand.vmem [shape: f32[64,32], index: 4, kind: input, shape index: {}]   ;;  %s1587_s5 = inlined_call_operand.vmem [shape: f32[32,2], index: 5, kind: input, shape index: {}]   ;;  %s1588_s6 = inlined_call_operand.hbm [shape: f32[1,2], index: 6, kind: output, shape index: {}]  }
   0x1   :  { %v1125_v0 = vld [vmem:[%s1583_s1 + $0x40] sm:$0xff]   ;;  %v1129_v4 = vld [vmem:[%s1583_s1 + $0x48] sm:$0xff]   ;;  %v1133_v8 = vld [vmem:[%s1583_s1 + $0x50] sm:$0xff]  }
   0x2   :  { %v1126_v1 = vld [vmem:[%s1583_s1 + $0xc0] sm:$0xff]   ;;  %997 = vmatprep.subr.bf16.mxu0 %v1125_v0  ;;  %v1130_v5 = vld [vmem:[%s1583_s1 + $0xc8] sm:$0xff]   ;;  %v1134_v9 = vld [vmem:[%s1583_s1 + $0xd0] sm:$0xff]  }
   0x3   :  { %v1127_v2 = vld [vmem:[%s1583_s1] sm:$0xff]   ;;  %1037 = vmatprep.subr.bf16.mxu1 %v1126_v1  ;;  %v1131_v6 = vld [vmem:[%s1583_s1 + $0x8] sm:$0xff]   ;;  %v1135_v10 = vld [vmem:[%s1583_s1 + $0x10] sm:$0xff]  }
   0x4   :  { %v1128_v3 = vld [vmem:[%s1583_s1 + $0x80] sm:$0xff]   ;;  %998 = vmatpush3.bf16.msra.mxu0 %v1127_v2  ;;  %v1132_v7 = vld [vmem:[%s1583_s1 + $0x88] sm:$0xff]   ;;  %v1136_v11 = vld [vmem:[%s1583_s1 + $0x90] sm:$0xff]  }
   0x5   :  { %1038 = vmatpush3.bf16.msra.mxu1 %v1128_v3  ;;  %999 = vmatprep.subr.bf16.mxu0 %v1129_v4  ;;  %v1137_v12 = vld [vmem:[%s1583_s1 + $0x58] sm:$0xff]   ;;  %v1141_v16 = vld [vmem:[%s1583_s1 + $0x60] sm:$0xff]   ;;  %v1145_v20 = vld [vmem:[%s1583_s1 + $0x68] sm:$0xff]  }
   0x6   :  { %1039 = vmatprep.subr.bf16.mxu1 %v1130_v5  ;;  %v1138_v13 = vld [vmem:[%s1583_s1 + $0xd8] sm:$0xff]   ;;  %v1142_v17 = vld [vmem:[%s1583_s1 + $0xe0] sm:$0xff]   ;;  %v1146_v21 = vld [vmem:[%s1583_s1 + $0xe8] sm:$0xff]  }
   0x7   :  { %v1139_v14 = vld [vmem:[%s1583_s1 + $0x18] sm:$0xff]   ;;  %v1143_v18 = vld [vmem:[%s1583_s1 + $0x20] sm:$0xff]   ;;  %v1147_v22 = vld [vmem:[%s1583_s1 + $0x28] sm:$0xff]  }
   0x8   :  { %1000 = vmatpush3.bf16.msra.mxu0 %v1131_v6  ;;  %v1140_v15 = vld [vmem:[%s1583_s1 + $0x98] sm:$0xff]   ;;  %v1144_v19 = vld [vmem:[%s1583_s1 + $0xa0] sm:$0xff]   ;;  %v1148_v23 = vld [vmem:[%s1583_s1 + $0xa8] sm:$0xff]  }
   0x9   :  { %1040 = vmatpush3.bf16.msra.mxu1 %v1132_v7  ;;  %1001 = vmatprep.subr.bf16.mxu0 %v1133_v8  ;;  %v1149_v24 = vld [vmem:[%s1583_s1 + $0x70] sm:$0xff]   ;;  %v1153_v28 = vld [vmem:[%s1583_s1 + $0x78] sm:$0xff]  }
   0xa   :  { %1041 = vmatprep.subr.bf16.mxu1 %v1134_v9  ;;  %v1150_v25 = vld [vmem:[%s1583_s1 + $0xf0] sm:$0xff]   ;;  %v1154_v29 = vld [vmem:[%s1583_s1 + $0xf8] sm:$0xff]  }
   0xb   :  { %v1151_v26 = vld [vmem:[%s1583_s1 + $0x30] sm:$0xff]   ;;  %v1155_v30 = vld [vmem:[%s1583_s1 + $0x38] sm:$0xff]  }
   0xc   :  { %1002 = vmatpush3.bf16.msra.mxu0 %v1135_v10  ;;  %v1152_v27 = vld [vmem:[%s1583_s1 + $0xb0] sm:$0xff]   ;;  %v1156_v31 = vld [vmem:[%s1583_s1 + $0xb8] sm:$0xff]  }
   0xd   :  { %1042 = vmatpush3.bf16.msra.mxu1 %v1136_v11  ;;  %1003 = vmatprep.subr.bf16.mxu0 %v1137_v12  ;;  %v1157_v32 = vld [vmem:[%s1582_s0] ss:$16 sps:$4 sm:$0xff]   ;;  %v1159_v33 = vld [vmem:[%s1582_s0 + $0x4] ss:$16 sps:$4 sm:$0xff]   ;;  %v1160_v34 = vld [vmem:[%s1582_s0 + $0x8] ss:$16 sps:$4 sm:$0xff]  }
   0xe   :  { %1043 = vmatprep.subr.bf16.mxu1 %v1138_v13  ;;  %v1162_v35 = vld [vmem:[%s1582_s0 + $0xc] ss:$16 sps:$4 sm:$0xff]   ;;  %409 = vmatprep.mubr.bf16.mxu0 %v1159_v33  ;;  %v1163_v36 = vld [vmem:[%s1582_s0 + $0x24] ss:$16 sps:$4 sm:$0xff]   ;;  %v1167_v38 = vld [vmem:[%s1582_s0 + $0x20] ss:$16 sps:$4 sm:$0xff]  }
   0xf   :  { %474 = vmatprep.mubr.bf16.mxu1 %v1162_v35  ;;  %v1165_v37 = vld [vmem:[%s1582_s0 + $0x2c] ss:$16 sps:$4 sm:$0xff]   ;;  %v1168_v39 = vld [vmem:[%s1582_s0 + $0x28] ss:$16 sps:$4 sm:$0xff]   ;;  %v1169_v40 = vld [vmem:[%s1582_s0 + $0x44] ss:$16 sps:$4 sm:$0xff]  }
  0x10   :  { %1004 = vmatpush3.bf16.msra.mxu0 %v1139_v14  ;;  %v1171_v41 = vld [vmem:[%s1582_s0 + $0x4c] ss:$16 sps:$4 sm:$0xff]  }
  0x11   :  { %1044 = vmatpush3.bf16.msra.mxu1 %v1140_v15  ;;  %1005 = vmatprep.subr.bf16.mxu0 %v1141_v16 }
  0x12   :  { %1045 = vmatprep.subr.bf16.mxu1 %v1142_v17 }
  0x14   :  { %1006 = vmatpush3.bf16.msra.mxu0 %v1143_v18 }
  0x15   :  { %1046 = vmatpush3.bf16.msra.mxu1 %v1144_v19  ;;  %1007 = vmatprep.subr.bf16.mxu0 %v1145_v20 }
  0x16   :  { %1047 = vmatprep.subr.bf16.mxu1 %v1146_v21 }
  0x18   :  { %1008 = vmatpush3.bf16.msra.mxu0 %v1147_v22 }
  0x19   :  { %1048 = vmatpush3.bf16.msra.mxu1 %v1148_v23  ;;  %1009 = vmatprep.subr.bf16.mxu0 %v1149_v24 }
  0x1a   :  { %1049 = vmatprep.subr.bf16.mxu1 %v1150_v25 }
  0x1c   :  { %1010 = vmatpush3.bf16.msra.mxu0 %v1151_v26 }
  0x1d   :  { %1050 = vmatpush3.bf16.msra.mxu1 %v1152_v27  ;;  %1011 = vmatprep.subr.bf16.mxu0 %v1153_v28 }
  0x1e   :  { %1051 = vmatprep.subr.bf16.mxu1 %v1154_v29 }
  0x20   :  { %1012 = vmatpush3.bf16.msra.mxu0 %v1155_v30 }
  0x21   :  { %1052 = vmatpush3.bf16.msra.mxu1 %v1156_v31 }
  0x23   :  { %410 = vmatmul.mubr.bf16.vlgmr.msra.gmra.mrb[0].mxu0 %v1157_v32 }
  0x24   :  { %475 = vmatmul.mubr.bf16.vlgmr.msra.gmra.mrb[0].mxu1 %v1160_v34  ;;  %417 = vmatprep.mubr.bf16.mxu0 %v1163_v36 }
  0x25   :  { %482 = vmatprep.mubr.bf16.mxu1 %v1165_v37 }
  0x26   :  { %11 = vsyncpa [#allocation3], 0  ;;  %v1173_v42 = vld [vmem:[%s1582_s0 + $0x40] ss:$16 sps:$4 sm:$0xff]   ;;  %v1174_v43 = vld [vmem:[%s1582_s0 + $0x48] ss:$16 sps:$4 sm:$0xff]  }
  0x27   :  { %v1175_v44 = vld [vmem:[%s1582_s0 + $0x64] ss:$16 sps:$4 sm:$0xff]   ;;  %v1177_v45 = vld [vmem:[%s1582_s0 + $0x6c] ss:$16 sps:$4 sm:$0xff]   ;;  %v1179_v46 = vld [vmem:[%s1582_s0 + $0x60] ss:$16 sps:$4 sm:$0xff]  }
  0x28   :  { %v1180_v47 = vld [vmem:[%s1582_s0 + $0x68] ss:$16 sps:$4 sm:$0xff]   ;;  %vm507_vm0 = vcmask 261120   ;;  %vm897_vm9 = vcmask 15360   ;;  %vm925_vm10 = vcmask 8192  }
  0x2b   :  { %418 = vmatmul.mubr.bf16.gmra.mrb[4].mxu0 %v1167_v38 }
  0x2c   :  { %483 = vmatmul.mubr.bf16.gmra.mrb[4].mxu1 %v1168_v39  ;;  %425 = vmatprep.mubr.bf16.mxu0 %v1169_v40 }
  0x2d   :  { %490 = vmatprep.mubr.bf16.mxu1 %v1171_v41 }
  0x33   :  { %426 = vmatmul.mubr.bf16.gmra.mrb[8].mxu0 %v1173_v42 }
  0x34   :  { %491 = vmatmul.mubr.bf16.gmra.mrb[8].mxu1 %v1174_v43  ;;  %433 = vmatprep.mubr.bf16.mxu0 %v1175_v44 }
  0x35   :  { %498 = vmatprep.mubr.bf16.mxu1 %v1177_v45 }
  0x3b   :  { %434 = vmatmul.mubr.bf16.gmra.mrb[12].mxu0 %v1179_v46 }
  0x3c   :  { %499 = vmatmul.mubr.bf16.gmra.mrb[12].mxu1 %v1180_v47 }
  0xf6   :  { %v1013_v48 = vpop.f32.mrb[0].mxu0 }
  0xf7   :  { %v1053_v49 = vpop.f32.mrb[0].mxu1  ;;  %v1014_v50 = vpop.f32.mrb[1].mxu0 }
  0xf8   :  { %v1015_v51 = vadd.f32 %v1014_v50, %v1013_v48  ;;  %v1054_v52 = vpop.f32.mrb[1].mxu1  ;;  %v1016_v53 = vpop.f32.mrb[2].mxu0  ;;  %v1225_v48 = vmov 0  }
  0xf9   :  { %v1055_v54 = vadd.f32 %v1054_v52, %v1053_v49  ;;  %v1056_v55 = vpop.f32.mrb[2].mxu1  ;;  %v1017_v56 = vpop.f32.mrb[3].mxu0  ;;  %1123 = vset.pattern.permute.xlu1 %v1225_v48  ;;  %1124 = vset.pattern.permute.xlu0 %v1225_v48 }
  0xfa   :  { %v1018_v57 = vadd.f32 %v1017_v56, %v1016_v53  ;;  %v1057_v58 = vpop.f32.mrb[3].mxu1 }
  0xfb   :  { %v1058_v59 = vadd.f32 %v1057_v58, %v1056_v55  ;;  %v1406_v60 = vadd.f32 %v1055_v54, %v1015_v51 }
  0xfd   :  { %v508_v61 = vsel %vm507_vm0, %v1406_v60, 0.0  ;;  %v1410_v62 = vadd.f32 %v1058_v59, %v1018_v57 }
  0xfe   :  { %509 = vadd.xlane.f32.xlu0 %v508_v61  ;;  %v1019_v63 = vpop.f32.mrb[4].mxu0 }
  0xff   :  { %v1059_v0 = vpop.f32.mrb[4].mxu1  ;;  %v1020_v1 = vpop.f32.mrb[5].mxu0  ;;  %v511_v8 = vsel %vm507_vm0, %v1410_v62, 0.0 }
 0x100   :  { %v1021_v2 = vadd.f32 %v1020_v1, %v1019_v63  ;;  %v1060_v3 = vpop.f32.mrb[5].mxu1  ;;  %v1022_v4 = vpop.f32.mrb[6].mxu0 }
 0x101   :  { %v1061_v5 = vadd.f32 %v1060_v3, %v1059_v0  ;;  %v1062_v6 = vpop.f32.mrb[6].mxu1  ;;  %v1023_v7 = vpop.f32.mrb[7].mxu0 }
 0x102   :  { %v1024_v9 = vadd.f32 %v1023_v7, %v1022_v4  ;;  %v1063_v10 = vpop.f32.mrb[7].mxu1  ;;  %512 = vadd.xlane.f32.xlu0 %v511_v8 }
 0x103   :  { %v1064_v11 = vadd.f32 %v1063_v10, %v1062_v6  ;;  %v485_v12 = vadd.f32 %v1061_v5, %v1021_v2 }
 0x105   :  { %v514_v13 = vsel %vm507_vm0, %v485_v12, 0.0  ;;  %v488_v14 = vadd.f32 %v1064_v11, %v1024_v9 }
 0x106   :  { %515 = vadd.xlane.f32.xlu1 %v514_v13  ;;  %v1025_v15 = vpop.f32.mrb[8].mxu0 }
 0x107   :  { %v1065_v16 = vpop.f32.mrb[8].mxu1  ;;  %v1026_v17 = vpop.f32.mrb[9].mxu0  ;;  %v517_v24 = vsel %vm507_vm0, %v488_v14, 0.0 }
 0x108   :  { %v1027_v18 = vadd.f32 %v1026_v17, %v1025_v15  ;;  %v1066_v19 = vpop.f32.mrb[9].mxu1  ;;  %v1028_v20 = vpop.f32.mrb[10].mxu0 }
 0x109   :  { %v1067_v21 = vadd.f32 %v1066_v19, %v1065_v16  ;;  %v1068_v22 = vpop.f32.mrb[10].mxu1  ;;  %v1029_v23 = vpop.f32.mrb[11].mxu0 }
 0x10a   :  { %v1030_v25 = vadd.f32 %v1029_v23, %v1028_v20  ;;  %v1069_v26 = vpop.f32.mrb[11].mxu1  ;;  %518 = vadd.xlane.f32.xlu1 %v517_v24 }
 0x10b   :  { %v1070_v27 = vadd.f32 %v1069_v26, %v1068_v22  ;;  %v493_v28 = vadd.f32 %v1067_v21, %v1027_v18  ;;  %v669_v26 = vld [vmem:[%s1585_s3 + $0x8] sm:$0xff] }
 0x10d   :  { %v520_v29 = vsel %vm507_vm0, %v493_v28, 0.0  ;;  %v496_v30 = vadd.f32 %v1070_v27, %v1030_v25  ;;  %v668_v25 = vld [vmem:[%s1585_s3] sm:$0xff]  ;;  %v670_v27 = vld [vmem:[%s1585_s3 + $0x10] sm:$0xff] }
 0x10e   :  { %521 = vadd.xlane.f32.xlu0 %v520_v29  ;;  %v1031_v31 = vpop.f32.mrb[12].mxu0  ;;  %v672_v29 = vld [vmem:[%s1585_s3 + $0x20] sm:$0xff] }
 0x10f   :  { %v1071_v32 = vpop.f32.mrb[12].mxu1  ;;  %v1032_v33 = vpop.f32.mrb[13].mxu0  ;;  %v523_v34 = vsel %vm507_vm0, %v496_v30, 0.0 }
 0x110   :  { %v1033_v35 = vadd.f32 %v1032_v33, %v1031_v31  ;;  %v1072_v36 = vpop.f32.mrb[13].mxu1  ;;  %524 = vadd.xlane.f32.xlu1 %v523_v34  ;;  %v1034_v37 = vpop.f32.mrb[14].mxu0  ;;  %v765_v31 = vld [vmem:[%s1587_s5 + $0x8] sm:$0xff] }
 0x111   :  { %v1073_v38 = vadd.f32 %v1072_v36, %v1071_v32  ;;  %v1074_v39 = vpop.f32.mrb[14].mxu1  ;;  %v1035_v40 = vpop.f32.mrb[15].mxu0 }
 0x112   :  { %v1036_v41 = vadd.f32 %v1035_v40, %v1034_v37  ;;  %v1075_v42 = vpop.f32.mrb[15].mxu1 }
 0x113   :  { %v1076_v43 = vadd.f32 %v1075_v42, %v1074_v39  ;;  %v501_v44 = vadd.f32 %v1073_v38, %v1033_v35 }
 0x115   :  { %v526_v45 = vsel %vm507_vm0, %v501_v44, 0.0  ;;  %v504_v46 = vadd.f32 %v1076_v43, %v1036_v41 }
 0x116   :  { %527 = vadd.xlane.f32.xlu0 %v526_v45 }
 0x117   :  { %v529_v47 = vsel %vm507_vm0, %v504_v46, 0.0 }
 0x118   :  { %530 = vadd.xlane.f32.xlu1 %v529_v47 }
 0x18b   :  { %v510_v49 = vpop.xlane.xlu0 %509 }
 0x18c   :  { %v532_v50 = vmul.f32 0.03125, %v510_v49 }
 0x18e   :  { %v1421_v51 = vsub.f32 %v1406_v60, %v532_v50  ;;  %v589_v50 = vld [vmem:[%s1584_s2 + $0x8] sm:$0xff] }
 0x18f   :  { %v513_v52 = vpop.xlane.xlu0 %512 }
 0x190   :  { %v533_v53 = vmul.f32 0.03125, %v513_v52  ;;  %v548_v54 = vmul.f32 %v1421_v51, %v1421_v51 }
 0x192   :  { %v1426_v55 = vsub.f32 %v1410_v62, %v533_v53  ;;  %v556_v56 = vsel %vm507_vm0, %v548_v54, 0.0 }
 0x193   :  { %v516_v57 = vpop.xlane.xlu1 %515  ;;  %557 = vadd.xlane.f32.xlu0 %v556_v56 }
 0x194   :  { %v534_v58 = vmul.f32 0.03125, %v516_v57  ;;  %v549_v59 = vmul.f32 %v1426_v55, %v1426_v55  ;;  %v673_v57 = vld [vmem:[%s1585_s3 + $0x28] sm:$0xff] }
 0x196   :  { %v1431_v61 = vsub.f32 %v485_v12, %v534_v58  ;;  %v559_v60 = vsel %vm507_vm0, %v549_v59, 0.0 }
 0x197   :  { %v519_v63 = vpop.xlane.xlu1 %518  ;;  %560 = vadd.xlane.f32.xlu1 %v559_v60  ;;  %v590_v60 = vld [vmem:[%s1584_s2 + $0x10] sm:$0xff] }
 0x198   :  { %v535_v0 = vmul.f32 0.03125, %v519_v63  ;;  %v550_v1 = vmul.f32 %v1431_v61, %v1431_v61 }
 0x19a   :  { %v1436_v62 = vsub.f32 %v488_v14, %v535_v0  ;;  %v562_v2 = vsel %vm507_vm0, %v550_v1, 0.0 }
 0x19b   :  { %563 = vadd.xlane.f32.xlu0 %v562_v2  ;;  %v522_v3 = vpop.xlane.xlu0 %521  ;;  %v766_v2 = vld [vmem:[%s1587_s5 + $0x10] sm:$0xff] }
 0x19c   :  { %v536_v4 = vmul.f32 0.03125, %v522_v3  ;;  %v551_v5 = vmul.f32 %v1436_v62, %v1436_v62  ;;  %v767_v3 = vld [vmem:[%s1587_s5 + $0x18] sm:$0xff] }
 0x19d   :  { %v525_v6 = vpop.xlane.xlu1 %524 }
 0x19e   :  { %v1441_v7 = vsub.f32 %v493_v28, %v536_v4  ;;  %v537_v8 = vmul.f32 0.03125, %v525_v6  ;;  %v565_v9 = vsel %vm507_vm0, %v551_v5, 0.0  ;;  %v671_v28 = vld [vmem:[%s1585_s3 + $0x18] sm:$0xff]  ;;  %v1113_v6 = vpack.c.bf16 %v767_v3, %v766_v2 }
 0x19f   :  { %566 = vadd.xlane.f32.xlu1 %v565_v9  ;;  %v591_v5 = vld [vmem:[%s1584_s2 + $0x18] sm:$0xff] }
 0x1a0   :  { %v1444_v10 = vsub.f32 %v496_v30, %v537_v8  ;;  %v552_v11 = vmul.f32 %v1441_v7, %v1441_v7  ;;  %v764_v30 = vld [vmem:[%s1587_s5] sm:$0xff] }
 0x1a1   :  { %v1109_v32 = vpack.c.bf16 %v765_v31, %v764_v30  ;;  %v675_v30 = vld [vmem:[%s1585_s3 + $0x38] sm:$0xff] }
 0x1a2   :  { %v568_v12 = vsel %vm507_vm0, %v552_v11, 0.0  ;;  %v553_v13 = vmul.f32 %v1444_v10, %v1444_v10 }
 0x1a3   :  { %569 = vadd.xlane.f32.xlu0 %v568_v12  ;;  %v528_v14 = vpop.xlane.xlu0 %527  ;;  %1110 = vmatprep.subr.bf16.mxu0 %v1109_v32 }
 0x1a4   :  { %v538_v15 = vmul.f32 0.03125, %v528_v14  ;;  %v571_v16 = vsel %vm507_vm0, %v553_v13, 0.0  ;;  %1117 = vmatprep.subr.bf16.mxu1 %v1109_v32  ;;  %1112 = vmatpush3.bf16.msra.mxu0 %v1109_v32 }
 0x1a5   :  { %v531_v17 = vpop.xlane.xlu1 %530  ;;  %572 = vadd.xlane.f32.xlu1 %v571_v16  ;;  %1119 = vmatpush3.bf16.msra.mxu1 %v1109_v32 }
 0x1a6   :  { %v1452_v18 = vsub.f32 %v501_v44, %v538_v15  ;;  %v539_v19 = vmul.f32 0.03125, %v531_v17  ;;  %v588_v44 = vld [vmem:[%s1584_s2] sm:$0xff]  ;;  %1114 = vmatprep.subr.bf16.mxu0 %v1113_v6  ;;  %1118 = vmatprep.subr.bf16.mxu1 %v1113_v6  ;;  %v593_v17 = vld [vmem:[%s1584_s2 + $0x28] sm:$0xff] }
 0x1a7   :  { %v592_v15 = vld [vmem:[%s1584_s2 + $0x20] sm:$0xff] }
 0x1a8   :  { %v1454_v20 = vsub.f32 %v504_v46, %v539_v19  ;;  %v554_v21 = vmul.f32 %v1452_v18, %v1452_v18  ;;  %1116 = vmatpush3.bf16.msra.mxu0 %v1113_v6 }
 0x1a9   :  { %1120 = vmatpush3.bf16.msra.mxu1 %v1113_v6 }
 0x1aa   :  { %v574_v22 = vsel %vm507_vm0, %v554_v21, 0.0  ;;  %v555_v23 = vmul.f32 %v1454_v20, %v1454_v20 }
 0x1ab   :  { %575 = vadd.xlane.f32.xlu0 %v574_v22 }
 0x1ac   :  { %v577_v24 = vsel %vm507_vm0, %v555_v23, 0.0  ;;  %v594_v23 = vld [vmem:[%s1584_s2 + $0x30] sm:$0xff] }
 0x1ad   :  { %578 = vadd.xlane.f32.xlu1 %v577_v24 }
 0x1be   :  { %678 = vperm.xlu1 %1123, %v668_v25   ;;  %v595_v25 = vld [vmem:[%s1584_s2 + $0x38] sm:$0xff] }
 0x1c2   :  { %683 = vperm.xlu1 %1123, %v669_v26  }
 0x1c6   :  { %688 = vperm.xlu1 %1123, %v670_v27  }
 0x1ca   :  { %693 = vperm.xlu1 %1123, %v671_v28  }
 0x1ce   :  { %698 = vperm.xlu1 %1123, %v672_v29   ;;  %v674_v29 = vld [vmem:[%s1585_s3 + $0x30] sm:$0xff] }
 0x220   :  { %v558_v33 = vpop.xlane.xlu0 %557 }
 0x221   :  { %v580_v34 = vmul.f32 0.03125, %v558_v33 }
 0x223   :  { %v596_v35 = vadd.f32 1e-05, %v580_v34 }
 0x224   :  { %v561_v36 = vpop.xlane.xlu1 %560 }
 0x225   :  { %1181 = vrsqrt.f32 %v596_v35  ;;  %v581_v37 = vmul.f32 0.03125, %v561_v36 }
 0x227   :  { %v597_v38 = vadd.f32 1e-05, %v581_v37 }
 0x228   :  { %v564_v39 = vpop.xlane.xlu0 %563 }
 0x229   :  { %1183 = vrsqrt.f32 %v597_v38  ;;  %v582_v40 = vmul.f32 0.03125, %v564_v39 }
 0x22b   :  { %v598_v41 = vadd.f32 1e-05, %v582_v40 }
 0x22c   :  { %v567_v42 = vpop.xlane.xlu1 %566 }
 0x22d   :  { %1185 = vrsqrt.f32 %v598_v41  ;;  %v583_v43 = vmul.f32 0.03125, %v567_v42  ;;  %v748_v42 = vld [vmem:[%s1586_s4] sm:$0xff] }
 0x22f   :  { %v1182_v45 = vpop.eup %1181  ;;  %v599_v46 = vadd.f32 1e-05, %v583_v43 }
 0x230   :  { %v570_v47 = vpop.xlane.xlu0 %569  ;;  %v612_v48 = vmul.f32 %v1182_v45, %v588_v44 }
 0x231   :  { %1187 = vrsqrt.f32 %v599_v46  ;;  %v584_v49 = vmul.f32 0.03125, %v570_v47  ;;  %v749_v47 = vld [vmem:[%s1586_s4 + $0x8] sm:$0xff] }
 0x232   :  { %v573_v52 = vpop.xlane.xlu1 %572  ;;  %622 = vperm.xlu0 %1124, %v612_v48  }
 0x233   :  { %v1184_v53 = vpop.eup %1183  ;;  %v600_v54 = vadd.f32 1e-05, %v584_v49  ;;  %v585_v56 = vmul.f32 0.03125, %v573_v52 }
 0x234   :  { %v613_v58 = vmul.f32 %v1184_v53, %v589_v50 }
 0x235   :  { %1189 = vrsqrt.f32 %v600_v54  ;;  %v601_v59 = vadd.f32 1e-05, %v585_v56 }
 0x236   :  { %627 = vperm.xlu1 %1123, %v613_v58   ;;  %703 = vperm.xlu0 %1124, %v673_v57   ;;  %v750_v57 = vld [vmem:[%s1586_s4 + $0x10] sm:$0xff] }
 0x237   :  { %v1186_v63 = vpop.eup %1185  ;;  %1191 = vrsqrt.f32 %v601_v59 }
 0x238   :  { %v576_v0 = vpop.xlane.xlu0 %575  ;;  %v614_v1 = vmul.f32 %v1186_v63, %v590_v60 }
 0x239   :  { %v586_v4 = vmul.f32 0.03125, %v576_v0 }
 0x23a   :  { %v579_v8 = vpop.xlane.xlu1 %578  ;;  %632 = vperm.xlu1 %1123, %v614_v1   ;;  %v751_v1 = vld [vmem:[%s1586_s4 + $0x18] sm:$0xff] }
 0x23b   :  { %v1188_v9 = vpop.eup %1187  ;;  %v602_v11 = vadd.f32 1e-05, %v586_v4  ;;  %v587_v12 = vmul.f32 0.03125, %v579_v8 }
 0x23c   :  { %v615_v13 = vmul.f32 %v1188_v9, %v591_v5  ;;  %v752_v9 = vld [vmem:[%s1586_s4 + $0x20] sm:$0xff] }
 0x23d   :  { %1193 = vrsqrt.f32 %v602_v11  ;;  %v603_v14 = vadd.f32 1e-05, %v587_v12  ;;  %v753_v11 = vld [vmem:[%s1586_s4 + $0x28] sm:$0xff] }
 0x23e   :  { %637 = vperm.xlu1 %1123, %v615_v13   ;;  %v679_v31 = vpop.permute.xlu1 %678 }
 0x23f   :  { %v1190_v16 = vpop.eup %1189  ;;  %1195 = vrsqrt.f32 %v603_v14 }
 0x240   :  { %v616_v19 = vmul.f32 %v1190_v16, %v592_v15 }
 0x241   :  { %v1192_v21 = vpop.eup %1191 }
 0x242   :  { %642 = vperm.xlu1 %1123, %v616_v19   ;;  %v617_v22 = vmul.f32 %v1192_v21, %v593_v17  ;;  %v684_v32 = vpop.permute.xlu1 %683 }
 0x244   :  { %647 = vperm.xlu0 %1124, %v617_v22  }
 0x246   :  { %v689_v33 = vpop.permute.xlu1 %688 }
 0x247   :  { %v1194_v24 = vpop.eup %1193 }
 0x248   :  { %v618_v26 = vmul.f32 %v1194_v24, %v594_v23  ;;  %v754_v24 = vld [vmem:[%s1586_s4 + $0x30] sm:$0xff] }
 0x249   :  { %v1196_v27 = vpop.eup %1195 }
 0x24a   :  { %652 = vperm.xlu1 %1123, %v618_v26   ;;  %v619_v28 = vmul.f32 %v1196_v27, %v595_v25  ;;  %v694_v34 = vpop.permute.xlu1 %693 }
 0x24c   :  { %657 = vperm.xlu0 %1124, %v619_v28   ;;  %v755_v28 = vld [vmem:[%s1586_s4 + $0x38] sm:$0xff]  ;;  %s1226_s4 = smov [#allocation2]  }
 0x24d   :  { %s933_s20 = sshll.u32 %s1226_s4, 4  ;;  %s934_s20 = int_to_ptr.vmem [resolvable:$true] %s933_s20 }
 0x24e   :  { %708 = vperm.xlu1 %1123, %v674_v29   ;;  %v699_v35 = vpop.permute.xlu1 %698  ;;  %s1201_s1 = scalar_lea.vmem %s934_s20, 16  ;;  %s1205_s5 = scalar_lea.vmem %s934_s20, 32 }
 0x24f   :  { %p1202_p0 = scmp.ne.s32.totalorder %s934_s20, %s1201_s1  ;;  %p1206_p1 = scmp.lt.s32.totalorder %s934_s20, %s934_s20 }
 0x250   :  { %713 = vperm.xlu0 %1124, %v675_v30   ;;  %p1207_p2 = scmp.lt.s32.totalorder %s1205_s5, %s1201_s1 }
 0x252   :  { %p1208_p3 = por %p1207_p2, %p1206_p1 }
 0x254   :  { %p1209_p4 = pnand %p1208_p3, %p1202_p0 }
 0x2b1   :  { %v623_v36 = vpop.permute.xlu0 %622 }
 0x2b2   :  { %v660_v37 = vmul.f32 %v623_v36, %v1421_v51 }
 0x2b4   :  { %v716_v38 = vadd.f32 %v679_v31, %v660_v37 }
 0x2b5   :  { %v628_v39 = vpop.permute.xlu1 %627  ;;  %v704_v53 = vpop.permute.xlu0 %703 }
 0x2b6   :  { %vm724_vm1 = vcmp.gt.f32.partialorder %v716_v38, 0.0  ;;  %v732_v40 = vmul.f32 0.2, %v716_v38  ;;  %v661_v41 = vmul.f32 %v628_v39, %v1426_v55 }
 0x2b8   :  { %v740_v43 = vsel %vm724_vm1, %v716_v38, %v732_v40  ;;  %v717_v44 = vadd.f32 %v684_v32, %v661_v41 }
 0x2b9   :  { %v633_v45 = vpop.permute.xlu1 %632  ;;  %v756_v46 = vmul.f32 %v748_v42, %v740_v43 }
 0x2ba   :  { %vm725_vm2 = vcmp.gt.f32.partialorder %v717_v44, 0.0  ;;  %v733_v51 = vmul.f32 0.2, %v717_v44  ;;  %v662_v48 = vmul.f32 %v633_v45, %v1431_v61 }
 0x2bb   :  { %1097 = vmatprep.mubr.msk.f32.mxu0 %vm507_vm0, %v756_v46 }
 0x2bc   :  { %v741_v49 = vsel %vm725_vm2, %v717_v44, %v733_v51  ;;  %v718_v55 = vadd.f32 %v689_v33, %v662_v48 }
 0x2bd   :  { %v757_v50 = vmul.f32 %v749_v47, %v741_v49  ;;  %v638_v52 = vpop.permute.xlu1 %637 }
 0x2be   :  { %vm726_vm3 = vcmp.gt.f32.partialorder %v718_v55, 0.0  ;;  %v734_v54 = vmul.f32 0.2, %v718_v55  ;;  %v663_v56 = vmul.f32 %v638_v52, %v1436_v62 }
 0x2bf   :  { %1098 = vmatmul.mubr.msk.f32.vlgmr.msra.gmra.mrb[16].mxu0 %vm507_vm0, %v757_v50 }
 0x2c0   :  { %v742_v58 = vsel %vm726_vm3, %v718_v55, %v734_v54  ;;  %v719_v59 = vadd.f32 %v694_v34, %v663_v56 }
 0x2c1   :  { %v643_v61 = vpop.permute.xlu1 %642  ;;  %v758_v60 = vmul.f32 %v750_v57, %v742_v58 }
 0x2c2   :  { %vm727_vm4 = vcmp.gt.f32.partialorder %v719_v59, 0.0  ;;  %v735_v63 = vmul.f32 0.2, %v719_v59  ;;  %v664_v0 = vmul.f32 %v643_v61, %v1441_v7 }
 0x2c3   :  { %1100 = vmatprep.mubr.msk.f32.mxu0 %vm507_vm0, %v758_v60  ;;  %v648_v62 = vpop.permute.xlu0 %647 }
 0x2c4   :  { %v743_v2 = vsel %vm727_vm4, %v719_v59, %v735_v63  ;;  %v720_v3 = vadd.f32 %v699_v35, %v664_v0  ;;  %v665_v4 = vmul.f32 %v648_v62, %v1444_v10 }
 0x2c5   :  { %v759_v5 = vmul.f32 %v751_v1, %v743_v2 }
 0x2c6   :  { %vm728_vm5 = vcmp.gt.f32.partialorder %v720_v3, 0.0  ;;  %v736_v6 = vmul.f32 0.2, %v720_v3  ;;  %v721_v8 = vadd.f32 %v704_v53, %v665_v4 }
 0x2c7   :  { %1101 = vmatmul.mubr.msk.f32.gmra.mrb[18].mxu0 %vm507_vm0, %v759_v5 }
 0x2c8   :  { %v744_v7 = vsel %vm728_vm5, %v720_v3, %v736_v6  ;;  %vm729_vm6 = vcmp.gt.f32.partialorder %v721_v8, 0.0  ;;  %v737_v12 = vmul.f32 0.2, %v721_v8 }
 0x2c9   :  { %v653_v13 = vpop.permute.xlu1 %652  ;;  %v760_v14 = vmul.f32 %v752_v9, %v744_v7 }
 0x2ca   :  { %v745_v10 = vsel %vm729_vm6, %v721_v8, %v737_v12  ;;  %v666_v17 = vmul.f32 %v653_v13, %v1452_v18 }
 0x2cb   :  { %v761_v15 = vmul.f32 %v753_v11, %v745_v10  ;;  %1103 = vmatprep.mubr.msk.f32.mxu1 %vm507_vm0, %v760_v14  ;;  %v658_v16 = vpop.permute.xlu0 %657 }
 0x2cc   :  { %v667_v21 = vmul.f32 %v658_v16, %v1454_v20 }
 0x2cd   :  { %v709_v19 = vpop.permute.xlu1 %708  ;;  %1104 = vmatmul.mubr.msk.f32.vlgmr.msra.gmra.mrb[16].mxu1 %vm507_vm0, %v761_v15 }
 0x2ce   :  { %v722_v22 = vadd.f32 %v709_v19, %v666_v17 }
 0x2cf   :  { %v714_v23 = vpop.permute.xlu0 %713 }
 0x2d0   :  { %vm730_vm7 = vcmp.gt.f32.partialorder %v722_v22, 0.0  ;;  %v738_v25 = vmul.f32 0.2, %v722_v22  ;;  %v723_v26 = vadd.f32 %v714_v23, %v667_v21 }
 0x2d2   :  { %v746_v27 = vsel %vm730_vm7, %v722_v22, %v738_v25  ;;  %vm731_vm8 = vcmp.gt.f32.partialorder %v723_v26, 0.0  ;;  %v739_v18 = vmul.f32 0.2, %v723_v26 }
 0x2d3   :  { %v762_v29 = vmul.f32 %v754_v24, %v746_v27 }
 0x2d4   :  { %v747_v30 = vsel %vm731_vm8, %v723_v26, %v739_v18 }
 0x2d5   :  { %v763_v31 = vmul.f32 %v755_v28, %v747_v30  ;;  %1106 = vmatprep.mubr.msk.f32.mxu1 %vm507_vm0, %v762_v29 }
 0x2d7   :  { %1107 = vmatmul.mubr.msk.f32.gmra.mrb[18].mxu1 %vm507_vm0, %v763_v31 }
 0x392   :  { %v1099_v20 = vpop.f32.mrb[16].mxu0 }
 0x393   :  { %v899_v32 = vsel %vm897_vm9, %v1099_v20, 0.0  ;;  %v858_v33 = vpop.f32.mrb[17].mxu0 }
 0x394   :  { %v898_v34 = vsel %vm897_vm9, %v858_v33, 0.0 }
 0x395   :  { %v900_v35 = vadd.f32 %v899_v32, %v898_v34 }
 0x39a   :  { %v1102_v36 = vpop.f32.mrb[18].mxu0 }
 0x39b   :  { %v868_v37 = vpop.f32.mrb[19].mxu0  ;;  %v903_v40 = vsel %vm897_vm9, %v1102_v36, 0.0 }
 0x39c   :  { %v901_v38 = vsel %vm897_vm9, %v868_v37, 0.0 }
 0x39d   :  { %v902_v39 = vadd.f32 %v901_v38, %v900_v35 }
 0x39f   :  { %v904_v41 = vadd.f32 %v903_v40, %v902_v39 }
 0x3a0   :  { %v1105_v42 = vpop.f32.mrb[16].mxu1 }
 0x3a1   :  { %v878_v43 = vpop.f32.mrb[17].mxu1  ;;  %v907_v46 = vsel %vm897_vm9, %v1105_v42, 0.0 }
 0x3a2   :  { %v905_v44 = vsel %vm897_vm9, %v878_v43, 0.0 }
 0x3a3   :  { %v906_v45 = vadd.f32 %v905_v44, %v904_v41 }
 0x3a5   :  { %v908_v47 = vadd.f32 %v907_v46, %v906_v45 }
 0x3aa   :  { %v1108_v51 = vpop.f32.mrb[18].mxu1 }
 0x3ab   :  { %v888_v48 = vpop.f32.mrb[19].mxu1  ;;  %v911_v50 = vsel %vm897_vm9, %v1108_v51, 0.0 }
 0x3ac   :  { %v909_v49 = vsel %vm897_vm9, %v888_v48, 0.0 }
 0x3ad   :  { %v910_v55 = vadd.f32 %v909_v49, %v908_v47 }
 0x3af   :  { %v912_v52 = vadd.f32 %v911_v50, %v910_v55 }
 0x3b1   :  { %v913_v53 = vrot.slane %v912_v52, 4 }
 0x3b3   :  { %v914_v54 = vadd.f32 %v913_v53, %v912_v52 }
 0x3b5   :  { %v915_v56 = vrot.slane %v914_v54, 2 }
 0x3b7   :  { %v916_v57 = vadd.f32 %v915_v56, %v914_v54 }
 0x3b9   :  { %v917_v58 = vrot.slane %v916_v57, 1 }
 0x3bb   :  { %v918_v59 = vadd.f32 %v917_v58, %v916_v57 }
 0x3bd   :  { %v919_v61 = vsub.f32 0.0, %v918_v59 }
 0x3bf   :  { %v920_v60 = vmul.f32 1.442695, %v919_v61 }
 0x3c1   :  { %1197 = vpow2.f32 %v920_v60 }
 0x3cb   :  { %v1198_v63 = vpop.eup %1197 }
 0x3cc   :  { %v922_v0 = vadd.f32 1.0, %v1198_v63 }
 0x3ce   :  { %1199 = vrcp.f32 %v922_v0 }
 0x3d8   :  { %v1200_v1 = vpop.eup %1199 }
 0x3d9   :  { %926 = vst.msk [vmem:[#allocation2] sm:$0x1] %vm925_vm10, %v1200_v1 }
 0x3da   :  { %1212 = shalt.err (!%p1209_p4)
}
 0x3db   :  { %s1213_s23 = scalar_lea.hbm %s1588_s6, 16 }
 0x3dc   :  { %p1214_p5 = scmp.ne.s32.totalorder %s1588_s6, %s1213_s23  ;;  %p1217_p6 = scmp.lt.u32.totalorder %s1213_s23, %s1588_s6 }
 0x3de   :  { %p1219_p7 = pnand %p1217_p6, %p1214_p5 }
 0x3e0   :  { %1222 = shalt.err (!%p1219_p7)
}
 0x3e1   :  { %936 = dma.vmem_to_hbm [thread:$0]  %s934_s20, 16, %s1588_s6, [#allocation3]  }
 0x3e2   :  { %1223 = dma.done.wait [#allocation3], 16  }
 0x3e3   :  { %1224 = vsyncadd [#allocation3], 4294967280 }
 0x3e4   :  { %940 = vsyncpa [#allocation3], 1 }

</bundles_post_ra>
